<compile_context>
chip_gen: v6e
topology: v6e:2x2x1
jax: 0.10.0
libtpu: 0.0.40
codegen_flags: <defaults>
</compile_context>

<pallas_src>
import jax
import jax.numpy as jnp
from jax.experimental import pallas as pl
from jax.experimental.pallas import tpu as pltpu

# 1000x fixed-point luma weights (exact: 299 + 587 + 114 = 1000).
_CRI, _CGI, _CBI = 299, 587, 114
_THRESH_FX = 127 * 1000          # y > 127  <=>  y_fx > 127000 (exact for ints)

# Tile caps: lane-dense, big enough to amortize the ~0.35 us/grid-step
# overhead, small enough that the worst-case return_y step (uint8 in + f32 y
# + int8 flag, double-buffered ~8 MiB) fits every generation's default
# scoped VMEM (v5e 16 MiB, v6e/v7x 32 MiB).
_MAX_TH = 256     # multiple of 32 (8-bit sublane tiling)
_MAX_TW = 2048    # multiple of 128 (lane-dense stores)
_MIN_TH = 64


def _luma_fx(r_ref, g_ref, b_ref):
    """Integer fixed-point luma (1000x), int32. Max 255000 << 2^31."""
    r = r_ref[...].astype(jnp.int32)
    g = g_ref[...].astype(jnp.int32)
    b = b_ref[...].astype(jnp.int32)
    return _CRI * r + _CGI * g + _CBI * b


def _bright_only_kernel(r_ref, g_ref, b_ref, bright_ref):
    y_fx = _luma_fx(r_ref, g_ref, b_ref)
    bright_ref[...] = (y_fx > _THRESH_FX).astype(jnp.int8)  # 1='亮色', 0='暗色'


def _luma_bright_kernel(r_ref, g_ref, b_ref, y_ref, bright_ref):
    y_fx = _luma_fx(r_ref, g_ref, b_ref)
    bright_ref[...] = (y_fx > _THRESH_FX).astype(jnp.int8)
    # Reuse y_fx: one sitofp + one mul instead of a 3-convert f32 chain.
    y = y_fx.astype(jnp.float32) * jnp.float32(1e-3)
    y_ref[...] = y.astype(y_ref.dtype)


def _pick_block(H, W, *, min_steps=8):
    """Lane-dense tile <= (256, 2048); shrink rows until >= min_steps grid
    steps so both v7x TensorCores get several pipelined steps."""
    tw = W if W <= _MAX_TW else _MAX_TW          # full-W or multiple of 128
    th = H if H <= _MAX_TH else _MAX_TH          # full-H or multiple of 32

    def n_steps(th_):
        return pl.cdiv(H, th_) * pl.cdiv(W, tw)

    # Halving keeps th a multiple of 32 (8-bit sublane tiling) when th % 64 == 0.
    while n_steps(th) < min_steps and th > _MIN_TH and th % 64 == 0:
        th //= 2
    return th, tw


def color_lightness_planes(r, g, b, *, return_y=False, y_dtype=jnp.float32):
    """Elementwise brightness flag (and optional luma) over (H, W) uint8 planes.

    Returns int8 flag (1 = '亮色', 0 = '暗色'); with return_y=True also returns
    the luma plane in `y_dtype` (f32 default, bf16 to halve output traffic).
    """
    assert r.shape == g.shape == b.shape and r.ndim == 2
    for name, p in (("r", r), ("g", g), ("b", b)):
        if p.dtype != jnp.uint8:
            raise TypeError(
                f"{name} must be uint8 (got {p.dtype}); convert explicitly to "
                "avoid hidden wrapper casts / silent wrap of float values.")

    H, W = r.shape
    th, tw = _pick_block(H, W)
    grid = (pl.cdiv(H, th), pl.cdiv(W, tw))      # ragged edges masked by Pallas
    spec = pl.BlockSpec((th, tw), lambda i, j: (i, j))
    cparams = pltpu.CompilerParams(
        dimension_semantics=("parallel", "parallel"))

    if return_y:
        y, bright = pl.pallas_call(
            _luma_bright_kernel,
            out_shape=(
                jax.ShapeDtypeStruct((H, W), y_dtype),
                jax.ShapeDtypeStruct((H, W), jnp.int8),
            ),
            grid=grid,
            in_specs=[spec, spec, spec],
            out_specs=(spec, spec),
            compiler_params=cparams,
        )(r, g, b)
        return y, bright

    bright = pl.pallas_call(
        _bright_only_kernel,
        out_shape=jax.ShapeDtypeStruct((H, W), jnp.int8),
        grid=grid,
        in_specs=[spec, spec, spec],
        out_specs=spec,
        compiler_params=cparams,
    )(r, g, b)
    return bright


def color_lightness(rgb):
    """Exact scalar semantics of the PyTorch module (host-side, no kernel).

    A single scalar compare should not launch a pallas_call plus a
    device->host sync; Python floats are f64, matching torch's default math.
    """
    _y = 0.299 * float(rgb[0]) + 0.587 * float(rgb[1]) + 0.114 * float(rgb[2])
    # TODO(synk): string return value has no kernel equivalent; selected host-side.
    return '亮色' if _y > 127 else '暗色'


if __name__ == "__main__":
    key = jax.random.PRNGKey(0)
    kr, kg, kb = jax.random.split(key, 3)

    # Small-ish planes; tile picker yields (64, 1024) -> grid (8, 1), i.e.
    # 4 steps per v7x TensorCore so the pipeline hides input DMA.
    H, W = 512, 1024
    r = jax.random.randint(kr, (H, W), 0, 256, dtype=jnp.int32).astype(jnp.uint8)
    g = jax.random.randint(kg, (H, W), 0, 256, dtype=jnp.int32).astype(jnp.uint8)
    b = jax.random.randint(kb, (H, W), 0, 256, dtype=jnp.int32).astype(jnp.uint8)

    bright_only = color_lightness_planes(r, g, b)                      # fast path
    y, bright = color_lightness_planes(r, g, b, return_y=True)         # f32 luma
    y_bf16, _ = color_lightness_planes(r, g, b, return_y=True,
                                       y_dtype=jnp.bfloat16)           # low-traffic luma
    jax.block_until_ready((bright_only, y, bright, y_bf16))

    # Reference: exact integer fixed-point (canonical semantics == PyTorch f64
    # for integer pixels), plus an f32 luma for the y plane.
    ri, gi, bi = (p.astype(jnp.int32) for p in (r, g, b))
    y_fx_ref = _CRI * ri + _CGI * gi + _CBI * bi
    bright_ref = (y_fx_ref > _THRESH_FX).astype(jnp.int8)
    y_ref = (0.299 * r.astype(jnp.float32)
             + 0.587 * g.astype(jnp.float32)
             + 0.114 * b.astype(jnp.float32))

    assert bool(jnp.all(bright_only == bright_ref))
    assert bool(jnp.all(bright == bright_ref))
    assert jnp.allclose(y, y_ref, atol=1e-3)
    assert jnp.allclose(y_bf16.astype(jnp.float32), y_ref, atol=1.0)

    # Non-tile-aligned shape exercises the pl.cdiv / masked-edge path.
    H2, W2 = 200, 300
    r2 = jax.random.randint(kr, (H2, W2), 0, 256, dtype=jnp.int32).astype(jnp.uint8)
    g2 = jax.random.randint(kg, (H2, W2), 0, 256, dtype=jnp.int32).astype(jnp.uint8)
    b2 = jax.random.randint(kb, (H2, W2), 0, 256, dtype=jnp.int32).astype(jnp.uint8)
    bright2 = color_lightness_planes(r2, g2, b2)
    jax.block_until_ready(bright2)
    y_fx_ref2 = (_CRI * r2.astype(jnp.int32) + _CGI * g2.astype(jnp.int32)
                 + _CBI * b2.astype(jnp.int32))
    assert bool(jnp.all(bright2 == (y_fx_ref2 > _THRESH_FX).astype(jnp.int8)))

    # Scalar-module semantics (matches the PyTorch forward exactly).
    assert color_lightness((200.0, 180.0, 90.0)) == '亮色'
    assert color_lightness((10.0, 20.0, 30.0)) == '暗色'

    print("KERNEL_OK")
</pallas_src>

<mosaic_0001>
module attributes {stable_mosaic.version = 11 : i64} {
  func.func @_bright_only_kernel(%arg0: i32, %arg1: i32, %arg2: memref<64x1024xi8, #tpu.memory_space<vmem>>, %arg3: memref<64x1024xi8, #tpu.memory_space<vmem>>, %arg4: memref<64x1024xi8, #tpu.memory_space<vmem>>, %arg5: memref<64x1024xi8, #tpu.memory_space<vmem>>) attributes {dimension_semantics = [#tpu.dimension_semantics<parallel>, #tpu.dimension_semantics<parallel>], iteration_bounds = array<i64: 8, 1>, scalar_prefetch = 0 : i64, scratch_operands = 0 : i64, tpu.core_type = #tpu.core_type<tc>, window_params = [{transform_indices = @transform_0, window_bounds = array<i64: 64, 1024>}, {transform_indices = @transform_1, window_bounds = array<i64: 64, 1024>}, {transform_indices = @transform_2, window_bounds = array<i64: 64, 1024>}, {transform_indices = @transform_3, window_bounds = array<i64: 64, 1024>}]} {
    %c0 = arith.constant 0 : index
    %c0_0 = arith.constant 0 : index
    %0 = vector.load %arg2[%c0, %c0_0] : memref<64x1024xi8, #tpu.memory_space<vmem>>, vector<64x1024xi8>
    %1 = arith.extui %0 : vector<64x1024xi8> to vector<64x1024xi32>
    %c0_1 = arith.constant 0 : index
    %c0_2 = arith.constant 0 : index
    %2 = vector.load %arg3[%c0_1, %c0_2] : memref<64x1024xi8, #tpu.memory_space<vmem>>, vector<64x1024xi8>
    %3 = arith.extui %2 : vector<64x1024xi8> to vector<64x1024xi32>
    %c0_3 = arith.constant 0 : index
    %c0_4 = arith.constant 0 : index
    %4 = vector.load %arg4[%c0_3, %c0_4] : memref<64x1024xi8, #tpu.memory_space<vmem>>, vector<64x1024xi8>
    %5 = arith.extui %4 : vector<64x1024xi8> to vector<64x1024xi32>
    %c299_i32 = arith.constant 299 : i32
    %6 = vector.broadcast %c299_i32 : i32 to vector<64x1024xi32>
    %7 = arith.muli %6, %1 : vector<64x1024xi32>
    %c587_i32 = arith.constant 587 : i32
    %8 = vector.broadcast %c587_i32 : i32 to vector<64x1024xi32>
    %9 = arith.muli %8, %3 : vector<64x1024xi32>
    %10 = arith.addi %7, %9 : vector<64x1024xi32>
    %c114_i32 = arith.constant 114 : i32
    %11 = vector.broadcast %c114_i32 : i32 to vector<64x1024xi32>
    %12 = arith.muli %11, %5 : vector<64x1024xi32>
    %13 = arith.addi %10, %12 : vector<64x1024xi32>
    %c127000_i32 = arith.constant 127000 : i32
    %14 = vector.broadcast %c127000_i32 : i32 to vector<64x1024xi32>
    %15 = arith.cmpi sgt, %13, %14 : vector<64x1024xi32>
    %16 = arith.extui %15 : vector<64x1024xi1> to vector<64x1024xi8>
    %c0_5 = arith.constant 0 : index
    %c0_6 = arith.constant 0 : index
    %17 = vector.load %arg5[%c0_5, %c0_6] : memref<64x1024xi8, #tpu.memory_space<vmem>>, vector<64x1024xi8>
    tpu.vector_store %arg5[%c0_5, %c0_6], %16 {strides = array<i32>} : memref<64x1024xi8, #tpu.memory_space<vmem>>, vector<64x1024xi8>,
    return
  }
  func.func @transform_0(%arg0: i32, %arg1: i32) -> (i32, i32) {
    %c0_i32 = arith.constant 0 : i32
    return %arg0, %arg1 : i32, i32
  }
  func.func @transform_1(%arg0: i32, %arg1: i32) -> (i32, i32) {
    %c0_i32 = arith.constant 0 : i32
    return %arg0, %arg1 : i32, i32
  }
  func.func @transform_2(%arg0: i32, %arg1: i32) -> (i32, i32) {
    %c0_i32 = arith.constant 0 : i32
    return %arg0, %arg1 : i32, i32
  }
  func.func @transform_3(%arg0: i32, %arg1: i32) -> (i32, i32) {
    %c0_i32 = arith.constant 0 : i32
    return %arg0, %arg1 : i32, i32
  }
}

</mosaic_0001>

<bundles_post_ra>
// kernel: tpu_custom_call.1
= control target key start
LH: loop header
LB: loop body
LE: loop exit
PB: predicated region body
PF: predicated region fallthrough
CT: control target
= control target key end

     0   :  { %s2003_s0 = inlined_call_operand.hbm [shape: u8[512,1024], index: 0, kind: input, shape index: {}]   ;;  %s2004_s1 = inlined_call_operand.hbm [shape: u8[512,1024], index: 1, kind: input, shape index: {}]   ;;  %s2005_s2 = inlined_call_operand.hbm [shape: u8[512,1024], index: 2, kind: input, shape index: {}]   ;;  %s2006_s3 = inlined_call_operand.hbm [shape: s8[512,1024], index: 3, kind: output, shape index: {}]  }
   0x1   :  { %2012 = sst [smem:[#allocation15_spill]] %s2004_s1 }
   0x2   :  { %8 = vsyncpa [#allocation3], 0 }
   0x3   :  { %10 = vsyncpa [#allocation3 + $0x1], 0 }
   0x4   :  { %11 = vsyncpa [#allocation6], 0 }
   0x5   :  { %13 = vsyncpa [#allocation6 + $0x1], 0 }
   0x6   :  { %14 = vsyncpa [#allocation4], 0 }
   0x7   :  { %16 = vsyncpa [#allocation4 + $0x1], 0  ;;  %s1665_s12 = smov 0   ;;  %s1667_s13 = smov 0  }
   0x8   :  { %s1669_s14 = smov 0   ;;  %s1671_s15 = smov 0  }
   0x9   :  { %s1673_s16 = smov 0   ;;  %s1675_s17 = smov 0  }
   0xa LB: > { %2013 = sst [smem:[#allocation12_spill]] %s1630_s16  ;;  %s1696_s18 = sadd.s32 4294967295, %s1634_s17   ;;  %s1634_s17 = sphi %s1675_s17, %s22_s17   ;;  %s1630_s16 = sphi %s1673_s16, %s2033_s16   ;;  %s1626_s15 = sphi %s1671_s15, %s2032_s15   ;;  %s1622_s14 = sphi %s1669_s14, %s2036_s14   ;;  %s1618_s13 = sphi %s1667_s13, %s2035_s13   ;;  %s1614_s12 = sphi %s1665_s12, %s2034_s12  }
   0xb   : > { %s1355_s19 = sadd.s32 4294967294, %s1634_s17   ;;  %s34_s20 = sadd.s32 1, %s1630_s16 }
   0xc   : > { %s43_s21 = sadd.s32 1, %s1622_s14  ;;  %p36_p0 = scmp.ge.s32.totalorder %s34_s20, 8 }
   0xd   : > { %p50_p1 = scmp.ne.s32.totalorder %s1622_s14, %s1618_s13  ;;  %p51_p2 = scmp.eq.s32.totalorder %s1634_s17, 0 }
   0xe   : > { %p56_p3 = scmp.ne.s32.totalorder %s1618_s13, %s1614_s12  ;;  %s2038_s20 = smov (%p36_p0, %s34_s20), 0 }
   0xf   : > { %2014 = sst [smem:[#allocation13_spill]] %s2038_s20  ;;  %p1708_p4 = por %p51_p2, %p50_p1 }
  0x10   : > { %p57_p5 = scmp.eq.s32.totalorder %s1696_s18, 0  ;;  %s38_s23 = ssub.s32 %s1630_s16, %s2038_s20 }
  0x11   : > { %p138_p6 = scmp.eq.s32.totalorder %s1696_s18, 7  ;;  %p41_p7 = scmp.eq.s32.totalorder %s38_s23, 0 }
  0x12   : > { %p1716_p8 = por %p57_p5, %p56_p3  ;;  %p144_p10 = scmp.eq.s32.totalorder %s1355_s19, 7 }
  0x13   : > { %p1720_p9 = por %p138_p6, %p50_p1  ;;  %p1411_p12 = scmp.lt.s32.totalorder %s1634_s17, 8 }
  0x14   : > { %s1725_s26 = scalar_select %p41_p7, %s1622_s14, %s43_s21  }
  0x15   : > { %p1727_p11 = por %p144_p10, %p56_p3  ;;  %s2007_s28 = sand.u32 1, %s1622_s14  }
  0x16   : > { %2018 = sst [smem:[#allocation14_spill]] %s1725_s26  ;;  %s1735_s29 = sshll.u32 %s2007_s28, 7 }
  0x17   : > { %s1738_s30 = sshll.u32 %s1630_s16, 11  ;;  %p1742_p13 = pnand %p1411_p12, %p1708_p4 }
  0x18   : > { %s188_s5 = sand.u32 1, %s1634_s17   ;;  %s2021_s1 = sld [smem:[#allocation15_spill]] }
  0x19   : > { %s192_s9 = scalar_lea.vmem [#allocation5], %s1735_s29  ;;  %p1370_p0 = scmp.ge.s32.totalorder %s1634_s17, 1 }
  0x1a   : > { %s202_s10 = sshll.u32 %s192_s9, 4  ;;  %p234_p1 = scmp.lt.s32.totalorder %s1634_s17, 9  ;;  %s203_s10 = int_to_ptr.vmem [resolvable:$true] %s202_s10 }
  0x1b   : > { %s1754_s11 = scalar_lea.sflag [#allocation6], %s188_s5  ;;  %p1468_p2 = pneg %p1742_p13 }
  0x1c   : > { %s1479_s19 = scalar_lea.vmem %s203_s10, 2048  ;;  %s1636_s21 = smov [#allocation5]  }
  0x1d   : > { %p1480_p3 = scmp.ne.s32.totalorder %s203_s10, %s1479_s19  ;;  %s1484_s22 = sshll.u32 %s1636_s21, 4  ;;  %s1485_s22 = int_to_ptr.vmem [resolvable:$false] %s1484_s22 }
  0x1e   : > { %s201_s8 = scalar_lea.hbm %s2021_s1, %s1738_s30  ;;  %s1486_s23 = scalar_lea.vmem %s1485_s22, 4096 }
  0x1f   : > { %p1482_p4 = pnand %p1480_p3, %p1468_p2  ;;  %p1487_p6 = scmp.lt.s32.totalorder %s203_s10, %s1485_s22 }
  0x20   : > { %p1488_p7 = scmp.lt.s32.totalorder %s1486_s23, %s1479_s19 }
  0x21   : > { %p1483_p5 = pneg %p1482_p4 }
  0x22   : > { %p1489_p10 = por %p1488_p7, %p1487_p6 }
  0x24   : > { %p1490_p12 = pnand %p1489_p10, %p1483_p5 }
  0x26   : > { %1493 = shalt.err (!%p1490_p12)
}
  0x27   : > { %s2010_s6 = smov 1024   ;;  %s1638_s5 = smov 64  }
  0x28   : > { %1403 = dma.hbm_to_vmem [thread:$0]  (!%p1742_p13), %s201_s8, 2048, %s203_s10, %s1754_s11, %s2010_s6, %s2010_s6, %s1638_s5  }
  0x29   : > { %p1771_p3 = pnand %p1370_p0, %p234_p1  ;;  %s177_s21 = scalar_lea.hbm %s2003_s0, %s1738_s30 }
  0x2a   : > { %s168_s22 = scalar_lea.vmem [#allocation2], %s1735_s29  ;;  %s225_s20 = scalar_lea.hbm %s2005_s2, %s1738_s30 }
  0x2b   : > { %s178_s23 = sshll.u32 %s168_s22, 4  ;;  %s2023_s16 = sand.u32 1, %s1622_s14   ;;  %s179_s23 = int_to_ptr.vmem [resolvable:$true] %s178_s23 }
  0x2c   : > { %s165_s26 = scalar_lea.sflag [#allocation3], %s2023_s16  ;;  %s1507_s8 = scalar_lea.vmem %s179_s23, 2048 }
  0x2d   : > { %p1508_p4 = scmp.ne.s32.totalorder %s179_s23, %s1507_s8  ;;  %s1639_s10 = smov [#allocation2]  }
  0x2e   : > { %s1512_s6 = sshll.u32 %s1639_s10, 4  ;;  %s1513_s6 = int_to_ptr.vmem [resolvable:$false] %s1512_s6 }
  0x2f   : > { %p1510_p0 = pnand %p1508_p4, %p1468_p2  ;;  %s1514_s9 = scalar_lea.vmem %s1513_s6, 4096 }
  0x30   : > { %p1515_p5 = scmp.lt.s32.totalorder %s179_s23, %s1513_s6  ;;  %p1516_p6 = scmp.lt.s32.totalorder %s1514_s9, %s1507_s8 }
  0x31   : > { %p1511_p1 = pneg %p1510_p0 }
  0x32   : > { %p1517_p7 = por %p1516_p6, %p1515_p5 }
  0x34   : > { %p1518_p10 = pnand %p1517_p7, %p1511_p1 }
  0x36   : > { %1521 = shalt.err (!%p1518_p10)
}
  0x37   : > { %s2024_s1 = smov 1024   ;;  %s216_s16 = scalar_lea.vmem [#allocation7], %s1735_s29 }
  0x38   : > { %1400 = dma.hbm_to_vmem [thread:$0]  (!%p1742_p13), %s177_s21, 2048, %s179_s23, %s165_s26, %s2024_s1, %s2024_s1, %s1638_s5  }
  0x39   : > { %s226_s28 = sshll.u32 %s216_s16, 4  ;;  %s1640_s6 = smov [#allocation7]   ;;  %s227_s28 = int_to_ptr.vmem [resolvable:$true] %s226_s28 }
  0x3a   : > { %s1535_s19 = scalar_lea.vmem %s227_s28, 2048  ;;  %s1540_s22 = sshll.u32 %s1640_s6, 4  ;;  %s1541_s22 = int_to_ptr.vmem [resolvable:$false] %s1540_s22 }
  0x3b   : > { %p1536_p12 = scmp.ne.s32.totalorder %s227_s28, %s1535_s19  ;;  %s1542_s8 = scalar_lea.vmem %s1541_s22, 4096 }
  0x3c   : > { %p1543_p1 = scmp.lt.s32.totalorder %s227_s28, %s1541_s22  ;;  %p1544_p5 = scmp.lt.s32.totalorder %s1542_s8, %s1535_s19 }
  0x3d   : > { %p1538_p4 = pnand %p1536_p12, %p1468_p2 }
  0x3e   : > { %p1545_p6 = por %p1544_p5, %p1543_p1 }
  0x3f   : > { %p1539_p0 = pneg %p1538_p4 }
  0x41   : > { %p1546_p7 = pnand %p1545_p6, %p1539_p0 }
  0x43   : > { %1549 = shalt.err (!%p1546_p7)
}
  0x44   : > { %1406 = dma.hbm_to_vmem [thread:$0]  (!%p1742_p13), %s225_s20, 2048, %s227_s28, %s1754_s11, %s2024_s1, %s2024_s1, %s1638_s5  }
  0x45   : > { %238 = sbr.rel (%p1771_p3) target bundleno = 296 (0x128), region = 32  ;;  %s1812_s21 = sand.u32 (!%p1771_p3), 1, %s1618_s13  }
  0x46   : > { %s1815_s4 = sshll.u32 (!%p1771_p3), %s1812_s21, 7  ;;  %s241_s23 = scalar_lea.sflag (!%p1771_p3), [#allocation3], %s1812_s21 }
  0x47   : > { %s1819_s10 = scalar_lea.vmem (!%p1771_p3), [#allocation2], %s1815_s4 }
  0x4a   : > { %1601 = dma.done.wait (%p1716_p8), %s241_s23, 2048  }
  0x4b   : > { %1603 = vsyncadd (%p1716_p8), %s241_s23, 4294965248  ;;  %s249_s20 = sand.u32 1, %s1696_s18   ;;  %s1827_s11 = scalar_lea.vmem [#allocation5], %s1815_s4 }
  0x4c   : > { %s250_s30 = scalar_lea.sflag [#allocation6], %s249_s20 }
  0x4d   : > { %1605 = dma.done.wait (%p1716_p8), %s250_s30, 4096  }
  0x4e   : > { %1607 = vsyncadd (%p1716_p8), %s250_s30, 4294963200  ;;  %v305_v0 = vld [vmem:[%s1819_s10] sm:$0xff]  ;;  %s1836_s18 = scalar_lea.vmem [#allocation7], %s1815_s4  ;;  %v306_v15 = vld [vmem:[%s1819_s10 + $0x8] sm:$0xff]  ;;  %s1855_s24 = scalar_lea.vmem [#allocation8], %s1815_s4 }
  0x4f   : > { %v449_v1 = vld [vmem:[%s1827_s11] sm:$0xff]  ;;  %v321_v2 = vunpack.c.0.s8 %v305_v0  ;;  %v329_v3 = vunpack.c.1.s8 %v305_v0  ;;  %v337_v4 = vunpack.c.2.s8 %v305_v0  ;;  %v345_v5 = vunpack.c.3.s8 %v305_v0  ;;  %v450_v44 = vld [vmem:[%s1827_s11 + $0x8] sm:$0xff]  ;;  %v307_v0 = vld [vmem:[%s1819_s10 + $0x10] sm:$0xff]  ;;  %s1388_s5 = sshll.u32 %s1626_s15, 11  ;;  %s1218_s7 = sshll.u32 %s1855_s24, 4  ;;  %s1954_s7 = int_to_ptr.vmem [resolvable:$true] %s1218_s7 }
  0x50   : > { %v465_v6 = vunpack.c.0.s8 %v449_v1  ;;  %v473_v7 = vunpack.c.1.s8 %v449_v1  ;;  %v481_v8 = vunpack.c.2.s8 %v449_v1  ;;  %v489_v9 = vunpack.c.3.s8 %v449_v1  ;;  %v593_v10 = vld [vmem:[%s1836_s18] sm:$0xff]  ;;  %v594_v61 = vld [vmem:[%s1836_s18 + $0x8] sm:$0xff]  ;;  %s1952_s16 = scalar_lea.hbm %s2006_s3, %s1388_s5  ;;  %s1202_s15 = scalar_lea.sflag [#allocation4], %s1812_s21 }
  0x51   : > { %v385_v11 = vand.u32 255, %v321_v2  ;;  %v393_v12 = vand.u32 255, %v329_v3  ;;  %v401_v13 = vand.u32 255, %v337_v4  ;;  %v409_v14 = vand.u32 255, %v345_v5  ;;  %s1550_s28 = scalar_lea.vmem %s1954_s7, 2048  ;;  %s1642_s19 = smov [#allocation8]  }
  0x52   : > { %v529_v16 = vand.u32 255, %v465_v6  ;;  %v537_v17 = vand.u32 255, %v473_v7  ;;  %v545_v18 = vand.u32 255, %v481_v8  ;;  %v553_v19 = vand.u32 255, %v489_v9  ;;  %p1551_p8 = scmp.ne.s32.totalorder %s1954_s7, %s1550_s28  ;;  %s1554_s6 = sshll.u32 %s1642_s19, 4  ;;  %s1555_s6 = int_to_ptr.vmem [resolvable:$false] %s1554_s6 }
  0x53   : > { %v609_v20 = vunpack.c.0.s8 %v593_v10  ;;  %v617_v21 = vunpack.c.1.s8 %v593_v10  ;;  %v625_v22 = vunpack.c.2.s8 %v593_v10  ;;  %v633_v23 = vunpack.c.3.s8 %v593_v10  ;;  %s1556_s22 = scalar_lea.vmem %s1555_s6, 4096  ;;  %p1557_p3 = scmp.lt.s32.totalorder %s1954_s7, %s1555_s6 }
  0x54   : > { %v737_v24 = vmul.u32 299, %v385_v11  ;;  %v745_v25 = vmul.u32 299, %v393_v12  ;;  %v322_v26 = vunpack.c.0.s8 %v306_v15  ;;  %v330_v27 = vunpack.c.1.s8 %v306_v15  ;;  %p1552_p13 = pnand %p1551_p8, %p1720_p9  ;;  %p1558_p10 = scmp.lt.s32.totalorder %s1556_s22, %s1550_s28 }
  0x55   : > { %v673_v28 = vand.u32 255, %v609_v20  ;;  %v681_v29 = vand.u32 255, %v617_v21  ;;  %v689_v30 = vand.u32 255, %v625_v22  ;;  %v697_v31 = vand.u32 255, %v633_v23 }
  0x56   : > { %v753_v32 = vmul.u32 299, %v401_v13  ;;  %v761_v33 = vmul.u32 299, %v409_v14  ;;  %v338_v34 = vunpack.c.2.s8 %v306_v15  ;;  %v346_v35 = vunpack.c.3.s8 %v306_v15  ;;  %p1553_p2 = pneg %p1552_p13  ;;  %p1559_p12 = por %p1558_p10, %p1557_p3 }
  0x57   : > { %v801_v36 = vmul.u32 587, %v529_v16  ;;  %v809_v37 = vmul.u32 587, %v537_v17  ;;  %v1840_v38 = vand.u32 255, %v322_v26  ;;  %v1842_v39 = vand.u32 255, %v330_v27 }
  0x58   : > { %v817_v40 = vmul.u32 587, %v545_v18  ;;  %v825_v41 = vmul.u32 587, %v553_v19  ;;  %v1844_v42 = vand.u32 255, %v338_v34  ;;  %v1846_v43 = vand.u32 255, %v346_v35  ;;  %p1560_p4 = pnand %p1559_p12, %p1553_p2 }
  0x59   : > { %v865_v45 = vadd.s32 %v801_v36, %v737_v24  ;;  %v873_v46 = vadd.s32 %v809_v37, %v745_v25  ;;  %v929_v47 = vmul.u32 114, %v673_v28  ;;  %v937_v48 = vmul.u32 114, %v681_v29  ;;  %v451_v28 = vld [vmem:[%s1827_s11 + $0x10] sm:$0xff] }
  0x5a   : > { %v881_v49 = vadd.s32 %v817_v40, %v753_v32  ;;  %v889_v50 = vadd.s32 %v825_v41, %v761_v33  ;;  %v945_v51 = vmul.u32 114, %v689_v30  ;;  %v953_v52 = vmul.u32 114, %v697_v31 }
  0x5b   : > { %v993_v53 = vadd.s32 %v929_v47, %v865_v45  ;;  %v1001_v54 = vadd.s32 %v937_v48, %v873_v46  ;;  %v466_v55 = vunpack.c.0.s8 %v450_v44  ;;  %v474_v56 = vunpack.c.1.s8 %v450_v44  ;;  %v595_v45 = vld [vmem:[%s1836_s18 + $0x10] sm:$0xff]  ;;  %v308_v48 = vld [vmem:[%s1819_s10 + $0x18] sm:$0xff] }
  0x5c   : > { %v1009_v57 = vadd.s32 %v945_v51, %v881_v49  ;;  %v1017_v58 = vadd.s32 %v953_v52, %v889_v50  ;;  %v482_v59 = vunpack.c.2.s8 %v450_v44  ;;  %v490_v60 = vunpack.c.3.s8 %v450_v44 }
  0x5d   : > { %vm1057_vm0 = vcmp.gt.s32.totalorder %v993_v53, 127000  ;;  %vm1065_vm1 = vcmp.gt.s32.totalorder %v1001_v54, 127000  ;;  %v530_v62 = vand.u32 255, %v466_v55  ;;  %v538_v63 = vand.u32 255, %v474_v56 }
  0x5e   : > { %vm1073_vm2 = vcmp.gt.s32.totalorder %v1009_v57, 127000  ;;  %vm1081_vm3 = vcmp.gt.s32.totalorder %v1017_v58, 127000  ;;  %vm1121_vm4 = vmpackc.low %vm1065_vm1, %vm1057_vm0  ;;  %v546_v1 = vand.u32 255, %v482_v59  ;;  %v554_v2 = vand.u32 255, %v490_v60 }
  0x5f   : > { %vm1122_vm5 = vmpackc.low %vm1081_vm3, %vm1073_vm2  ;;  %v610_v3 = vunpack.c.0.s8 %v594_v61  ;;  %v618_v4 = vunpack.c.1.s8 %v594_v61  ;;  %v626_v5 = vunpack.c.2.s8 %v594_v61  ;;  %v634_v6 = vunpack.c.3.s8 %v594_v61 }
  0x60   : > { %vm1123_vm6 = vmpackc.even %vm1122_vm5, %vm1121_vm4  ;;  %v738_v7 = vmul.u32 299, %v1840_v38  ;;  %v746_v8 = vmul.u32 299, %v1842_v39  ;;  %v323_v9 = vunpack.c.0.s8 %v307_v0  ;;  %v331_v10 = vunpack.c.1.s8 %v307_v0 }
  0x61   : > { %v1641_v11 = vmov 0   ;;  %v674_v13 = vand.u32 255, %v610_v3  ;;  %v682_v14 = vand.u32 255, %v618_v4  ;;  %v690_v15 = vand.u32 255, %v626_v5 }
  0x62   : > { %v1169_v12 = vsel %vm1123_vm6, 16843009, %v1641_v11  ;;  %v698_v16 = vand.u32 255, %v634_v6  ;;  %v754_v17 = vmul.u32 299, %v1844_v42  ;;  %v762_v18 = vmul.u32 299, %v1846_v43 }
  0x63   : > { %1185 = vst [vmem:[%s1855_s24] sm:$0xff] %v1169_v12  ;;  %v339_v19 = vunpack.c.2.s8 %v307_v0  ;;  %v802_v20 = vmul.u32 587, %v530_v62  ;;  %v810_v21 = vmul.u32 587, %v538_v63  ;;  %v347_v22 = vunpack.c.3.s8 %v307_v0 }
  0x64   : > { %v387_v23 = vand.u32 255, %v323_v9  ;;  %v818_v24 = vmul.u32 587, %v546_v1  ;;  %v826_v25 = vmul.u32 587, %v554_v2  ;;  %v395_v26 = vand.u32 255, %v331_v10 }
  0x65   : > { %v403_v27 = vand.u32 255, %v339_v19  ;;  %v866_v29 = vadd.s32 %v802_v20, %v738_v7  ;;  %v874_v30 = vadd.s32 %v810_v21, %v746_v8  ;;  %v930_v31 = vmul.u32 114, %v674_v13 }
  0x66   : > { %v938_v32 = vmul.u32 114, %v682_v14  ;;  %v882_v33 = vadd.s32 %v818_v24, %v754_v17  ;;  %v890_v34 = vadd.s32 %v826_v25, %v762_v18  ;;  %v946_v35 = vmul.u32 114, %v690_v15 }
  0x67   : > { %v954_v36 = vmul.u32 114, %v698_v16  ;;  %v994_v37 = vadd.s32 %v930_v31, %v866_v29  ;;  %v411_v39 = vand.u32 255, %v347_v22  ;;  %v467_v40 = vunpack.c.0.s8 %v451_v28  ;;  %v452_v16 = vld [vmem:[%s1827_s11 + $0x18] sm:$0xff] }
  0x68   : > { %v1002_v38 = vadd.s32 %v938_v32, %v874_v30  ;;  %v1010_v41 = vadd.s32 %v946_v35, %v882_v33  ;;  %v475_v43 = vunpack.c.1.s8 %v451_v28  ;;  %v483_v44 = vunpack.c.2.s8 %v451_v28  ;;  %v596_v29 = vld [vmem:[%s1836_s18 + $0x18] sm:$0xff] }
  0x69   : > { %v1018_v42 = vadd.s32 %v954_v36, %v890_v34  ;;  %vm1058_vm7 = vcmp.gt.s32.totalorder %v994_v37, 127000  ;;  %v491_v46 = vunpack.c.3.s8 %v451_v28  ;;  %v531_v47 = vand.u32 255, %v467_v40 }
  0x6a   : > { %vm1066_vm8 = vcmp.gt.s32.totalorder %v1002_v38, 127000  ;;  %vm1074_vm9 = vcmp.gt.s32.totalorder %v1010_v41, 127000  ;;  %v539_v49 = vand.u32 255, %v475_v43  ;;  %v547_v50 = vand.u32 255, %v483_v44 }
  0x6b   : > { %vm1082_vm10 = vcmp.gt.s32.totalorder %v1018_v42, 127000  ;;  %vm1124_vm11 = vmpackc.low %vm1066_vm8, %vm1058_vm7  ;;  %v555_v51 = vand.u32 255, %v491_v46  ;;  %v611_v52 = vunpack.c.0.s8 %v595_v45  ;;  %v619_v53 = vunpack.c.1.s8 %v595_v45  ;;  %v309_v42 = vld [vmem:[%s1819_s10 + $0x20] sm:$0xff] }
  0x6c   : > { %vm1125_vm12 = vmpackc.low %vm1082_vm10, %vm1074_vm9  ;;  %v627_v54 = vunpack.c.2.s8 %v595_v45  ;;  %v635_v55 = vunpack.c.3.s8 %v595_v45  ;;  %v739_v56 = vmul.u32 299, %v387_v23  ;;  %v747_v57 = vmul.u32 299, %v395_v26 }
  0x6d   : > { %vm1126_vm13 = vmpackc.even %vm1125_vm12, %vm1124_vm11  ;;  %v324_v58 = vunpack.c.0.s8 %v308_v48  ;;  %v675_v60 = vand.u32 255, %v611_v52  ;;  %v683_v61 = vand.u32 255, %v619_v53  ;;  %v755_v0 = vmul.u32 299, %v403_v27 }
  0x6e   : > { %v1170_v59 = vsel %vm1126_vm13, 16843009, %v1641_v11  ;;  %v691_v62 = vand.u32 255, %v627_v54  ;;  %v699_v63 = vand.u32 255, %v635_v55  ;;  %v763_v1 = vmul.u32 299, %v411_v39 }
  0x6f   : > { %1186 = vst [vmem:[%s1855_s24 + $0x8] sm:$0xff] %v1170_v59  ;;  %v332_v2 = vunpack.c.1.s8 %v308_v48  ;;  %v803_v3 = vmul.u32 587, %v531_v47  ;;  %v811_v4 = vmul.u32 587, %v539_v49  ;;  %v340_v5 = vunpack.c.2.s8 %v308_v48 }
  0x70   : > { %v348_v6 = vunpack.c.3.s8 %v308_v48  ;;  %v819_v7 = vmul.u32 587, %v547_v50  ;;  %v827_v8 = vmul.u32 587, %v555_v51  ;;  %v388_v9 = vand.u32 255, %v324_v58 }
  0x71   : > { %v396_v10 = vand.u32 255, %v332_v2  ;;  %v867_v12 = vadd.s32 %v803_v3, %v739_v56  ;;  %v875_v13 = vadd.s32 %v811_v4, %v747_v57  ;;  %v931_v14 = vmul.u32 114, %v675_v60  ;;  %v453_v3 = vld [vmem:[%s1827_s11 + $0x20] sm:$0xff] }
  0x72   : > { %v939_v15 = vmul.u32 114, %v683_v61  ;;  %v883_v17 = vadd.s32 %v819_v7, %v755_v0  ;;  %v891_v18 = vadd.s32 %v827_v8, %v763_v1  ;;  %v947_v19 = vmul.u32 114, %v691_v62  ;;  %v597_v8 = vld [vmem:[%s1836_s18 + $0x20] sm:$0xff] }
  0x73   : > { %v955_v20 = vmul.u32 114, %v699_v63  ;;  %v995_v21 = vadd.s32 %v931_v14, %v867_v12  ;;  %v404_v23 = vand.u32 255, %v340_v5  ;;  %v412_v24 = vand.u32 255, %v348_v6 }
  0x74   : > { %v1003_v22 = vadd.s32 %v939_v15, %v875_v13  ;;  %v1011_v25 = vadd.s32 %v947_v19, %v883_v17  ;;  %v468_v27 = vunpack.c.0.s8 %v452_v16  ;;  %v476_v28 = vunpack.c.1.s8 %v452_v16 }
  0x75   : > { %v1019_v26 = vadd.s32 %v955_v20, %v891_v18  ;;  %vm1059_vm14 = vcmp.gt.s32.totalorder %v995_v21, 127000  ;;  %v484_v30 = vunpack.c.2.s8 %v452_v16  ;;  %v492_v31 = vunpack.c.3.s8 %v452_v16 }
  0x76   : > { %vm1067_vm15 = vcmp.gt.s32.totalorder %v1003_v22, 127000  ;;  %vm1075_vm0 = vcmp.gt.s32.totalorder %v1011_v25, 127000  ;;  %v532_v32 = vand.u32 255, %v468_v27  ;;  %v540_v33 = vand.u32 255, %v476_v28 }
  0x77   : > { %vm1083_vm1 = vcmp.gt.s32.totalorder %v1019_v26, 127000  ;;  %vm1127_vm2 = vmpackc.low %vm1067_vm15, %vm1059_vm14  ;;  %v548_v34 = vand.u32 255, %v484_v30  ;;  %v556_v35 = vand.u32 255, %v492_v31  ;;  %v612_v36 = vunpack.c.0.s8 %v596_v29 }
  0x78   : > { %vm1128_vm3 = vmpackc.low %vm1083_vm1, %vm1075_vm0  ;;  %v620_v37 = vunpack.c.1.s8 %v596_v29  ;;  %v628_v38 = vunpack.c.2.s8 %v596_v29  ;;  %v636_v39 = vunpack.c.3.s8 %v596_v29  ;;  %v740_v40 = vmul.u32 299, %v388_v9 }
  0x79   : > { %vm1129_vm4 = vmpackc.even %vm1128_vm3, %vm1127_vm2  ;;  %v748_v41 = vmul.u32 299, %v396_v10  ;;  %v676_v44 = vand.u32 255, %v612_v36  ;;  %v756_v46 = vmul.u32 299, %v404_v23  ;;  %v325_v53 = vunpack.c.0.s8 %v309_v42  ;;  %v310_v23 = vld [vmem:[%s1819_s10 + $0x28] sm:$0xff] }
  0x7a   : > { %v1171_v43 = vsel %vm1129_vm4, 16843009, %v1641_v11  ;;  %v684_v45 = vand.u32 255, %v620_v37  ;;  %v692_v47 = vand.u32 255, %v628_v38  ;;  %v700_v48 = vand.u32 255, %v636_v39 }
  0x7b   : > { %1187 = vst [vmem:[%s1855_s24 + $0x10] sm:$0xff] %v1171_v43  ;;  %v764_v49 = vmul.u32 299, %v412_v24  ;;  %v804_v50 = vmul.u32 587, %v532_v32  ;;  %v333_v54 = vunpack.c.1.s8 %v309_v42  ;;  %v341_v58 = vunpack.c.2.s8 %v309_v42 }
  0x7c   : > { %v812_v51 = vmul.u32 587, %v540_v33  ;;  %v820_v52 = vmul.u32 587, %v548_v34  ;;  %v349_v2 = vunpack.c.3.s8 %v309_v42  ;;  %v389_v6 = vand.u32 255, %v325_v53 }
  0x7d   : > { %v828_v55 = vmul.u32 587, %v556_v35  ;;  %v868_v56 = vadd.s32 %v804_v50, %v740_v40  ;;  %v932_v57 = vmul.u32 114, %v676_v44  ;;  %v397_v7 = vand.u32 255, %v333_v54 }
  0x7e   : > { %v876_v59 = vadd.s32 %v812_v51, %v748_v41  ;;  %v884_v60 = vadd.s32 %v820_v52, %v756_v46  ;;  %v940_v61 = vmul.u32 114, %v684_v45  ;;  %v948_v62 = vmul.u32 114, %v692_v47 }
  0x7f   : > { %v892_v63 = vadd.s32 %v828_v55, %v764_v49  ;;  %v956_v0 = vmul.u32 114, %v700_v48  ;;  %v996_v1 = vadd.s32 %v932_v57, %v868_v56  ;;  %v405_v10 = vand.u32 255, %v341_v58  ;;  %v454_v48 = vld [vmem:[%s1827_s11 + $0x28] sm:$0xff] }
  0x80   : > { %v1004_v4 = vadd.s32 %v940_v61, %v876_v59  ;;  %v1012_v5 = vadd.s32 %v948_v62, %v884_v60  ;;  %v413_v12 = vand.u32 255, %v349_v2  ;;  %v469_v13 = vunpack.c.0.s8 %v453_v3  ;;  %v598_v61 = vld [vmem:[%s1836_s18 + $0x28] sm:$0xff] }
  0x81   : > { %v1020_v9 = vadd.s32 %v956_v0, %v892_v63  ;;  %vm1060_vm5 = vcmp.gt.s32.totalorder %v996_v1, 127000  ;;  %v477_v14 = vunpack.c.1.s8 %v453_v3  ;;  %v485_v16 = vunpack.c.2.s8 %v453_v3 }
  0x82   : > { %vm1068_vm6 = vcmp.gt.s32.totalorder %v1004_v4, 127000  ;;  %vm1076_vm7 = vcmp.gt.s32.totalorder %v1012_v5, 127000  ;;  %v493_v17 = vunpack.c.3.s8 %v453_v3  ;;  %v613_v18 = vunpack.c.0.s8 %v597_v8  ;;  %v311_v3 = vld [vmem:[%s1819_s10 + $0x30] sm:$0xff] }
  0x83   : > { %vm1084_vm8 = vcmp.gt.s32.totalorder %v1020_v9, 127000  ;;  %vm1872_vm9 = vmpackc.low %vm1068_vm6, %vm1060_vm5  ;;  %v533_v19 = vand.u32 255, %v469_v13  ;;  %v541_v20 = vand.u32 255, %v477_v14  ;;  %v621_v21 = vunpack.c.1.s8 %v597_v8 }
  0x84   : > { %vm1131_vm10 = vmpackc.low %vm1084_vm8, %vm1076_vm7  ;;  %v629_v22 = vunpack.c.2.s8 %v597_v8  ;;  %v549_v24 = vand.u32 255, %v485_v16  ;;  %v557_v25 = vand.u32 255, %v493_v17  ;;  %v637_v26 = vunpack.c.3.s8 %v597_v8 }
  0x85   : > { %vm1132_vm11 = vmpackc.even %vm1131_vm10, %vm1872_vm9  ;;  %v677_v27 = vand.u32 255, %v613_v18  ;;  %v685_v29 = vand.u32 255, %v621_v21  ;;  %v741_v31 = vmul.u32 299, %v389_v6  ;;  %v749_v33 = vmul.u32 299, %v397_v7 }
  0x86   : > { %v1172_v28 = vsel %vm1132_vm11, 16843009, %v1641_v11  ;;  %v693_v30 = vand.u32 255, %v629_v22  ;;  %v701_v32 = vand.u32 255, %v637_v26  ;;  %v757_v34 = vmul.u32 299, %v405_v10 }
  0x87   : > { %1188 = vst [vmem:[%s1855_s24 + $0x18] sm:$0xff] %v1172_v28  ;;  %v326_v35 = vunpack.c.0.s8 %v310_v23  ;;  %v765_v36 = vmul.u32 299, %v413_v12  ;;  %v805_v37 = vmul.u32 587, %v533_v19  ;;  %v334_v38 = vunpack.c.1.s8 %v310_v23 }
  0x88   : > { %v342_v39 = vunpack.c.2.s8 %v310_v23  ;;  %v813_v40 = vmul.u32 587, %v541_v20  ;;  %v821_v41 = vmul.u32 587, %v549_v24  ;;  %v350_v42 = vunpack.c.3.s8 %v310_v23 }
  0x89   : > { %v390_v43 = vand.u32 255, %v326_v35  ;;  %v829_v44 = vmul.u32 587, %v557_v25  ;;  %v869_v45 = vadd.s32 %v805_v37, %v741_v31  ;;  %v933_v46 = vmul.u32 114, %v677_v27 }
  0x8a   : > { %v398_v47 = vand.u32 255, %v334_v38  ;;  %v877_v49 = vadd.s32 %v813_v40, %v749_v33  ;;  %v885_v50 = vadd.s32 %v821_v41, %v757_v34  ;;  %v941_v51 = vmul.u32 114, %v685_v29 }
  0x8b   : > { %v949_v52 = vmul.u32 114, %v693_v30  ;;  %v893_v53 = vadd.s32 %v829_v44, %v765_v36  ;;  %v957_v54 = vmul.u32 114, %v701_v32  ;;  %v997_v55 = vadd.s32 %v933_v46, %v869_v45  ;;  %v455_v32 = vld [vmem:[%s1827_s11 + $0x30] sm:$0xff] }
  0x8c   : > { %v406_v56 = vand.u32 255, %v342_v39  ;;  %v1005_v57 = vadd.s32 %v941_v51, %v877_v49  ;;  %v414_v59 = vand.u32 255, %v350_v42  ;;  %v470_v60 = vunpack.c.0.s8 %v454_v48  ;;  %v599_v49 = vld [vmem:[%s1836_s18 + $0x30] sm:$0xff] }
  0x8d   : > { %v1013_v58 = vadd.s32 %v949_v52, %v885_v50  ;;  %v1021_v62 = vadd.s32 %v957_v54, %v893_v53  ;;  %vm1061_vm12 = vcmp.gt.s32.totalorder %v997_v55, 127000  ;;  %v478_v63 = vunpack.c.1.s8 %v454_v48  ;;  %v312_v52 = vld [vmem:[%s1819_s10 + $0x38] sm:$0xff] }
  0x8e   : > { %v486_v0 = vunpack.c.2.s8 %v454_v48  ;;  %vm1069_vm13 = vcmp.gt.s32.totalorder %v1005_v57, 127000  ;;  %v494_v1 = vunpack.c.3.s8 %v454_v48  ;;  %v534_v2 = vand.u32 255, %v470_v60 }
  0x8f   : > { %vm1077_vm14 = vcmp.gt.s32.totalorder %v1013_v58, 127000  ;;  %vm1085_vm15 = vcmp.gt.s32.totalorder %v1021_v62, 127000  ;;  %vm1133_vm0 = vmpackc.low %vm1069_vm13, %vm1061_vm12  ;;  %v542_v4 = vand.u32 255, %v478_v63  ;;  %v614_v6 = vunpack.c.0.s8 %v598_v61 }
  0x90   : > { %v550_v5 = vand.u32 255, %v486_v0  ;;  %vm1134_vm1 = vmpackc.low %vm1085_vm15, %vm1077_vm14  ;;  %v558_v7 = vand.u32 255, %v494_v1  ;;  %v622_v8 = vunpack.c.1.s8 %v598_v61  ;;  %v630_v9 = vunpack.c.2.s8 %v598_v61 }
  0x91   : > { %v638_v10 = vunpack.c.3.s8 %v598_v61  ;;  %vm1135_vm2 = vmpackc.even %vm1134_vm1, %vm1133_vm0  ;;  %v678_v12 = vand.u32 255, %v614_v6  ;;  %v742_v13 = vmul.u32 299, %v390_v43  ;;  %v750_v14 = vmul.u32 299, %v398_v47 }
  0x92   : > { %v327_v15 = vunpack.c.0.s8 %v311_v3  ;;  %v1173_v16 = vsel %vm1135_vm2, 16843009, %v1641_v11  ;;  %v686_v17 = vand.u32 255, %v622_v8  ;;  %v694_v18 = vand.u32 255, %v630_v9 }
  0x93   : > { %v702_v19 = vand.u32 255, %v638_v10  ;;  %1189 = vst [vmem:[%s1855_s24 + $0x20] sm:$0xff] %v1173_v16  ;;  %v758_v20 = vmul.u32 299, %v406_v56  ;;  %v766_v21 = vmul.u32 299, %v414_v59  ;;  %v335_v22 = vunpack.c.1.s8 %v311_v3 }
  0x94   : > { %v343_v23 = vunpack.c.2.s8 %v311_v3  ;;  %v806_v24 = vmul.u32 587, %v534_v2  ;;  %v814_v25 = vmul.u32 587, %v542_v4  ;;  %v351_v26 = vunpack.c.3.s8 %v311_v3 }
  0x95   : > { %v391_v27 = vand.u32 255, %v327_v15  ;;  %v822_v28 = vmul.u32 587, %v550_v5  ;;  %v830_v29 = vmul.u32 587, %v558_v7  ;;  %v399_v30 = vand.u32 255, %v335_v22 }
  0x96   : > { %v407_v31 = vand.u32 255, %v343_v23  ;;  %v870_v33 = vadd.s32 %v806_v24, %v742_v13  ;;  %v878_v34 = vadd.s32 %v814_v25, %v750_v14  ;;  %v934_v35 = vmul.u32 114, %v678_v12 }
  0x97   : > { %v942_v36 = vmul.u32 114, %v686_v17  ;;  %v886_v37 = vadd.s32 %v822_v28, %v758_v20  ;;  %v894_v38 = vadd.s32 %v830_v29, %v766_v21  ;;  %v950_v39 = vmul.u32 114, %v694_v18  ;;  %v456_v20 = vld [vmem:[%s1827_s11 + $0x38] sm:$0xff] }
  0x98   : > { %v958_v40 = vmul.u32 114, %v702_v19  ;;  %v998_v41 = vadd.s32 %v934_v35, %v870_v33  ;;  %v415_v43 = vand.u32 255, %v351_v26  ;;  %v471_v44 = vunpack.c.0.s8 %v455_v32  ;;  %v600_v33 = vld [vmem:[%s1836_s18 + $0x38] sm:$0xff] }
  0x99   : > { %v1006_v42 = vadd.s32 %v942_v36, %v878_v34  ;;  %v1014_v45 = vadd.s32 %v950_v39, %v886_v37  ;;  %v479_v47 = vunpack.c.1.s8 %v455_v32  ;;  %v487_v48 = vunpack.c.2.s8 %v455_v32 }
  0x9a   : > { %v1022_v46 = vadd.s32 %v958_v40, %v894_v38  ;;  %vm1062_vm3 = vcmp.gt.s32.totalorder %v998_v41, 127000  ;;  %v495_v50 = vunpack.c.3.s8 %v455_v32  ;;  %v535_v51 = vand.u32 255, %v471_v44 }
  0x9b   : > { %vm1070_vm4 = vcmp.gt.s32.totalorder %v1006_v42, 127000  ;;  %vm1078_vm5 = vcmp.gt.s32.totalorder %v1014_v45, 127000  ;;  %v543_v53 = vand.u32 255, %v479_v47  ;;  %v551_v54 = vand.u32 255, %v487_v48 }
  0x9c   : > { %vm1086_vm6 = vcmp.gt.s32.totalorder %v1022_v46, 127000  ;;  %vm1136_vm7 = vmpackc.low %vm1070_vm4, %vm1062_vm3  ;;  %v559_v55 = vand.u32 255, %v495_v50  ;;  %v615_v56 = vunpack.c.0.s8 %v599_v49  ;;  %v623_v57 = vunpack.c.1.s8 %v599_v49  ;;  %v313_v46 = vld [vmem:[%s1819_s10 + $0x40] sm:$0xff] }
  0x9d   : > { %vm1137_vm8 = vmpackc.low %vm1086_vm6, %vm1078_vm5  ;;  %v631_v58 = vunpack.c.2.s8 %v599_v49  ;;  %v639_v59 = vunpack.c.3.s8 %v599_v49  ;;  %v743_v60 = vmul.u32 299, %v391_v27  ;;  %v751_v61 = vmul.u32 299, %v399_v30 }
  0x9e   : > { %vm1138_vm9 = vmpackc.even %vm1137_vm8, %vm1136_vm7  ;;  %v328_v62 = vunpack.c.0.s8 %v312_v52  ;;  %v679_v0 = vand.u32 255, %v615_v56  ;;  %v687_v1 = vand.u32 255, %v623_v57  ;;  %v759_v4 = vmul.u32 299, %v407_v31 }
  0x9f   : > { %v1174_v63 = vsel %vm1138_vm9, 16843009, %v1641_v11  ;;  %v695_v2 = vand.u32 255, %v631_v58  ;;  %v703_v3 = vand.u32 255, %v639_v59  ;;  %v767_v5 = vmul.u32 299, %v415_v43 }
  0xa0   : > { %1190 = vst [vmem:[%s1855_s24 + $0x28] sm:$0xff] %v1174_v63  ;;  %v336_v6 = vunpack.c.1.s8 %v312_v52  ;;  %v807_v7 = vmul.u32 587, %v535_v51  ;;  %v815_v8 = vmul.u32 587, %v543_v53  ;;  %v344_v9 = vunpack.c.2.s8 %v312_v52 }
  0xa1   : > { %v352_v10 = vunpack.c.3.s8 %v312_v52  ;;  %v823_v12 = vmul.u32 587, %v551_v54  ;;  %v831_v13 = vmul.u32 587, %v559_v55  ;;  %v392_v14 = vand.u32 255, %v328_v62 }
  0xa2   : > { %v400_v15 = vand.u32 255, %v336_v6  ;;  %v871_v16 = vadd.s32 %v807_v7, %v743_v60  ;;  %v879_v17 = vadd.s32 %v815_v8, %v751_v61  ;;  %v935_v18 = vmul.u32 114, %v679_v0  ;;  %v457_v7 = vld [vmem:[%s1827_s11 + $0x40] sm:$0xff] }
  0xa3   : > { %v943_v19 = vmul.u32 114, %v687_v1  ;;  %v887_v21 = vadd.s32 %v823_v12, %v759_v4  ;;  %v895_v22 = vadd.s32 %v831_v13, %v767_v5  ;;  %v951_v23 = vmul.u32 114, %v695_v2  ;;  %v601_v13 = vld [vmem:[%s1836_s18 + $0x40] sm:$0xff] }
  0xa4   : > { %v959_v24 = vmul.u32 114, %v703_v3  ;;  %v999_v25 = vadd.s32 %v935_v18, %v871_v16  ;;  %v408_v27 = vand.u32 255, %v344_v9  ;;  %v416_v28 = vand.u32 255, %v352_v10 }
  0xa5   : > { %v1007_v26 = vadd.s32 %v943_v19, %v879_v17  ;;  %v1015_v29 = vadd.s32 %v951_v23, %v887_v21  ;;  %v472_v31 = vunpack.c.0.s8 %v456_v20  ;;  %v480_v32 = vunpack.c.1.s8 %v456_v20 }
  0xa6   : > { %v1023_v30 = vadd.s32 %v959_v24, %v895_v22  ;;  %vm1063_vm10 = vcmp.gt.s32.totalorder %v999_v25, 127000  ;;  %v488_v34 = vunpack.c.2.s8 %v456_v20  ;;  %v496_v35 = vunpack.c.3.s8 %v456_v20 }
  0xa7   : > { %vm1071_vm11 = vcmp.gt.s32.totalorder %v1007_v26, 127000  ;;  %vm1079_vm12 = vcmp.gt.s32.totalorder %v1015_v29, 127000  ;;  %v536_v36 = vand.u32 255, %v472_v31  ;;  %v544_v37 = vand.u32 255, %v480_v32 }
  0xa8   : > { %vm1087_vm13 = vcmp.gt.s32.totalorder %v1023_v30, 127000  ;;  %vm1139_vm14 = vmpackc.low %vm1071_vm11, %vm1063_vm10  ;;  %v552_v38 = vand.u32 255, %v488_v34  ;;  %v560_v39 = vand.u32 255, %v496_v35  ;;  %v616_v40 = vunpack.c.0.s8 %v600_v33 }
  0xa9   : > { %vm1140_vm15 = vmpackc.low %vm1087_vm13, %vm1079_vm12  ;;  %v624_v41 = vunpack.c.1.s8 %v600_v33  ;;  %v632_v42 = vunpack.c.2.s8 %v600_v33  ;;  %v640_v43 = vunpack.c.3.s8 %v600_v33  ;;  %v744_v44 = vmul.u32 299, %v392_v14 }
  0xaa   : > { %vm1141_vm0 = vmpackc.even %vm1140_vm15, %vm1139_vm14  ;;  %v752_v45 = vmul.u32 299, %v400_v15  ;;  %v680_v48 = vand.u32 255, %v616_v40  ;;  %v760_v50 = vmul.u32 299, %v408_v27  ;;  %v353_v57 = vunpack.c.0.s8 %v313_v46  ;;  %v314_v27 = vld [vmem:[%s1819_s10 + $0x48] sm:$0xff] }
  0xab   : > { %v1175_v47 = vsel %vm1141_vm0, 16843009, %v1641_v11  ;;  %v688_v49 = vand.u32 255, %v624_v41  ;;  %v696_v51 = vand.u32 255, %v632_v42  ;;  %v704_v52 = vand.u32 255, %v640_v43 }
  0xac   : > { %1191 = vst [vmem:[%s1855_s24 + $0x30] sm:$0xff] %v1175_v47  ;;  %v768_v53 = vmul.u32 299, %v416_v28  ;;  %v808_v54 = vmul.u32 587, %v536_v36  ;;  %v361_v58 = vunpack.c.1.s8 %v313_v46  ;;  %v369_v62 = vunpack.c.2.s8 %v313_v46 }
  0xad   : > { %v816_v55 = vmul.u32 587, %v544_v37  ;;  %v824_v56 = vmul.u32 587, %v552_v38  ;;  %v377_v6 = vunpack.c.3.s8 %v313_v46  ;;  %v417_v10 = vand.u32 255, %v353_v57 }
  0xae   : > { %v832_v59 = vmul.u32 587, %v560_v39  ;;  %v872_v60 = vadd.s32 %v808_v54, %v744_v44  ;;  %v936_v61 = vmul.u32 114, %v680_v48  ;;  %v425_v12 = vand.u32 255, %v361_v58 }
  0xaf   : > { %v880_v63 = vadd.s32 %v816_v55, %v752_v45  ;;  %v888_v0 = vadd.s32 %v824_v56, %v760_v50  ;;  %v944_v1 = vmul.u32 114, %v688_v49  ;;  %v952_v2 = vmul.u32 114, %v696_v51 }
  0xb0   : > { %v896_v3 = vadd.s32 %v832_v59, %v768_v53  ;;  %v960_v4 = vmul.u32 114, %v704_v52  ;;  %v1000_v5 = vadd.s32 %v936_v61, %v872_v60  ;;  %v433_v15 = vand.u32 255, %v369_v62  ;;  %v458_v52 = vld [vmem:[%s1827_s11 + $0x48] sm:$0xff] }
  0xb1   : > { %v1008_v8 = vadd.s32 %v944_v1, %v880_v63  ;;  %v1016_v9 = vadd.s32 %v952_v2, %v888_v0  ;;  %v441_v16 = vand.u32 255, %v377_v6  ;;  %v497_v17 = vunpack.c.0.s8 %v457_v7  ;;  %v602_v1 = vld [vmem:[%s1836_s18 + $0x48] sm:$0xff] }
  0xb2   : > { %v1024_v14 = vadd.s32 %v960_v4, %v896_v3  ;;  %vm1064_vm1 = vcmp.gt.s32.totalorder %v1000_v5, 127000  ;;  %v505_v18 = vunpack.c.1.s8 %v457_v7  ;;  %v513_v20 = vunpack.c.2.s8 %v457_v7 }
  0xb3   : > { %vm1072_vm2 = vcmp.gt.s32.totalorder %v1008_v8, 127000  ;;  %vm1080_vm3 = vcmp.gt.s32.totalorder %v1016_v9, 127000  ;;  %v521_v21 = vunpack.c.3.s8 %v457_v7  ;;  %v641_v22 = vunpack.c.0.s8 %v601_v13  ;;  %v315_v7 = vld [vmem:[%s1819_s10 + $0x50] sm:$0xff] }
  0xb4   : > { %vm1088_vm4 = vcmp.gt.s32.totalorder %v1024_v14, 127000  ;;  %vm1898_vm5 = vmpackc.low %vm1072_vm2, %vm1064_vm1  ;;  %v561_v23 = vand.u32 255, %v497_v17  ;;  %v569_v24 = vand.u32 255, %v505_v18  ;;  %v649_v25 = vunpack.c.1.s8 %v601_v13 }
  0xb5   : > { %vm1143_vm6 = vmpackc.low %vm1088_vm4, %vm1080_vm3  ;;  %v657_v26 = vunpack.c.2.s8 %v601_v13  ;;  %v577_v28 = vand.u32 255, %v513_v20  ;;  %v585_v29 = vand.u32 255, %v521_v21  ;;  %v665_v30 = vunpack.c.3.s8 %v601_v13 }
  0xb6   : > { %vm1144_vm7 = vmpackc.even %vm1143_vm6, %vm1898_vm5  ;;  %v705_v31 = vand.u32 255, %v641_v22  ;;  %v713_v33 = vand.u32 255, %v649_v25  ;;  %v769_v35 = vmul.u32 299, %v417_v10  ;;  %v777_v37 = vmul.u32 299, %v425_v12 }
  0xb7   : > { %v1176_v32 = vsel %vm1144_vm7, 16843009, %v1641_v11  ;;  %v721_v34 = vand.u32 255, %v657_v26  ;;  %v729_v36 = vand.u32 255, %v665_v30  ;;  %v785_v38 = vmul.u32 299, %v433_v15 }
  0xb8   : > { %1192 = vst [vmem:[%s1855_s24 + $0x38] sm:$0xff] %v1176_v32  ;;  %v354_v39 = vunpack.c.0.s8 %v314_v27  ;;  %v793_v40 = vmul.u32 299, %v441_v16  ;;  %v833_v41 = vmul.u32 587, %v561_v23  ;;  %v362_v42 = vunpack.c.1.s8 %v314_v27 }
  0xb9   : > { %v370_v43 = vunpack.c.2.s8 %v314_v27  ;;  %v841_v44 = vmul.u32 587, %v569_v24  ;;  %v849_v45 = vmul.u32 587, %v577_v28  ;;  %v378_v46 = vunpack.c.3.s8 %v314_v27 }
  0xba   : > { %v418_v47 = vand.u32 255, %v354_v39  ;;  %v857_v48 = vmul.u32 587, %v585_v29  ;;  %v897_v49 = vadd.s32 %v833_v41, %v769_v35  ;;  %v961_v50 = vmul.u32 114, %v705_v31 }
  0xbb   : > { %v426_v51 = vand.u32 255, %v362_v42  ;;  %v905_v53 = vadd.s32 %v841_v44, %v777_v37  ;;  %v913_v54 = vadd.s32 %v849_v45, %v785_v38  ;;  %v969_v55 = vmul.u32 114, %v713_v33 }
  0xbc   : > { %v977_v56 = vmul.u32 114, %v721_v34  ;;  %v921_v57 = vadd.s32 %v857_v48, %v793_v40  ;;  %v985_v58 = vmul.u32 114, %v729_v36  ;;  %v1025_v59 = vadd.s32 %v961_v50, %v897_v49  ;;  %v459_v36 = vld [vmem:[%s1827_s11 + $0x50] sm:$0xff] }
  0xbd   : > { %v434_v60 = vand.u32 255, %v370_v43  ;;  %v1033_v61 = vadd.s32 %v969_v55, %v905_v53  ;;  %v442_v63 = vand.u32 255, %v378_v46  ;;  %v498_v0 = vunpack.c.0.s8 %v458_v52  ;;  %v603_v53 = vld [vmem:[%s1836_s18 + $0x50] sm:$0xff] }
  0xbe   : > { %v1041_v62 = vadd.s32 %v977_v56, %v913_v54  ;;  %v1049_v2 = vadd.s32 %v985_v58, %v921_v57  ;;  %vm1089_vm8 = vcmp.gt.s32.totalorder %v1025_v59, 127000  ;;  %v506_v3 = vunpack.c.1.s8 %v458_v52  ;;  %v316_v56 = vld [vmem:[%s1819_s10 + $0x58] sm:$0xff] }
  0xbf   : > { %v514_v4 = vunpack.c.2.s8 %v458_v52  ;;  %vm1097_vm9 = vcmp.gt.s32.totalorder %v1033_v61, 127000  ;;  %v522_v5 = vunpack.c.3.s8 %v458_v52  ;;  %v562_v6 = vand.u32 255, %v498_v0 }
  0xc0   : > { %vm1105_vm10 = vcmp.gt.s32.totalorder %v1041_v62, 127000  ;;  %vm1113_vm11 = vcmp.gt.s32.totalorder %v1049_v2, 127000  ;;  %vm1145_vm12 = vmpackc.low %vm1097_vm9, %vm1089_vm8  ;;  %v570_v8 = vand.u32 255, %v506_v3  ;;  %v642_v10 = vunpack.c.0.s8 %v602_v1 }
  0xc1   : > { %v578_v9 = vand.u32 255, %v514_v4  ;;  %vm1146_vm13 = vmpackc.low %vm1113_vm11, %vm1105_vm10  ;;  %v586_v12 = vand.u32 255, %v522_v5  ;;  %v650_v13 = vunpack.c.1.s8 %v602_v1  ;;  %v658_v14 = vunpack.c.2.s8 %v602_v1 }
  0xc2   : > { %v666_v15 = vunpack.c.3.s8 %v602_v1  ;;  %vm1147_vm14 = vmpackc.even %vm1146_vm13, %vm1145_vm12  ;;  %v706_v16 = vand.u32 255, %v642_v10  ;;  %v770_v17 = vmul.u32 299, %v418_v47  ;;  %v778_v18 = vmul.u32 299, %v426_v51 }
  0xc3   : > { %v355_v19 = vunpack.c.0.s8 %v315_v7  ;;  %v1177_v20 = vsel %vm1147_vm14, 16843009, %v1641_v11  ;;  %v714_v21 = vand.u32 255, %v650_v13  ;;  %v722_v22 = vand.u32 255, %v658_v14 }
  0xc4   : > { %v730_v23 = vand.u32 255, %v666_v15  ;;  %1193 = vst [vmem:[%s1855_s24 + $0x40] sm:$0xff] %v1177_v20  ;;  %v786_v24 = vmul.u32 299, %v434_v60  ;;  %v794_v25 = vmul.u32 299, %v442_v63  ;;  %v363_v26 = vunpack.c.1.s8 %v315_v7 }
  0xc5   : > { %v371_v27 = vunpack.c.2.s8 %v315_v7  ;;  %v834_v28 = vmul.u32 587, %v562_v6  ;;  %v842_v29 = vmul.u32 587, %v570_v8  ;;  %v379_v30 = vunpack.c.3.s8 %v315_v7 }
  0xc6   : > { %v419_v31 = vand.u32 255, %v355_v19  ;;  %v850_v32 = vmul.u32 587, %v578_v9  ;;  %v858_v33 = vmul.u32 587, %v586_v12  ;;  %v427_v34 = vand.u32 255, %v363_v26 }
  0xc7   : > { %v435_v35 = vand.u32 255, %v371_v27  ;;  %v898_v37 = vadd.s32 %v834_v28, %v770_v17  ;;  %v906_v38 = vadd.s32 %v842_v29, %v778_v18  ;;  %v962_v39 = vmul.u32 114, %v706_v16 }
  0xc8   : > { %v970_v40 = vmul.u32 114, %v714_v21  ;;  %v914_v41 = vadd.s32 %v850_v32, %v786_v24  ;;  %v922_v42 = vadd.s32 %v858_v33, %v794_v25  ;;  %v978_v43 = vmul.u32 114, %v722_v22  ;;  %v460_v24 = vld [vmem:[%s1827_s11 + $0x58] sm:$0xff] }
  0xc9   : > { %v986_v44 = vmul.u32 114, %v730_v23  ;;  %v1026_v45 = vadd.s32 %v962_v39, %v898_v37  ;;  %v443_v47 = vand.u32 255, %v379_v30  ;;  %v499_v48 = vunpack.c.0.s8 %v459_v36  ;;  %v604_v37 = vld [vmem:[%s1836_s18 + $0x58] sm:$0xff] }
  0xca   : > { %v1034_v46 = vadd.s32 %v970_v40, %v906_v38  ;;  %v1042_v49 = vadd.s32 %v978_v43, %v914_v41  ;;  %v507_v51 = vunpack.c.1.s8 %v459_v36  ;;  %v515_v52 = vunpack.c.2.s8 %v459_v36 }
  0xcb   : > { %v1050_v50 = vadd.s32 %v986_v44, %v922_v42  ;;  %vm1090_vm15 = vcmp.gt.s32.totalorder %v1026_v45, 127000  ;;  %v523_v54 = vunpack.c.3.s8 %v459_v36  ;;  %v563_v55 = vand.u32 255, %v499_v48 }
  0xcc   : > { %vm1098_vm0 = vcmp.gt.s32.totalorder %v1034_v46, 127000  ;;  %vm1106_vm1 = vcmp.gt.s32.totalorder %v1042_v49, 127000  ;;  %v571_v57 = vand.u32 255, %v507_v51  ;;  %v579_v58 = vand.u32 255, %v515_v52 }
  0xcd   : > { %vm1114_vm2 = vcmp.gt.s32.totalorder %v1050_v50, 127000  ;;  %vm1148_vm3 = vmpackc.low %vm1098_vm0, %vm1090_vm15  ;;  %v587_v59 = vand.u32 255, %v523_v54  ;;  %v643_v60 = vunpack.c.0.s8 %v603_v53  ;;  %v651_v61 = vunpack.c.1.s8 %v603_v53  ;;  %v317_v50 = vld [vmem:[%s1819_s10 + $0x60] sm:$0xff] }
  0xce   : > { %vm1149_vm4 = vmpackc.low %vm1114_vm2, %vm1106_vm1  ;;  %v659_v62 = vunpack.c.2.s8 %v603_v53  ;;  %v667_v63 = vunpack.c.3.s8 %v603_v53  ;;  %v771_v0 = vmul.u32 299, %v419_v31  ;;  %v779_v1 = vmul.u32 299, %v427_v34 }
  0xcf   : > { %vm1150_vm5 = vmpackc.even %vm1149_vm4, %vm1148_vm3  ;;  %v356_v2 = vunpack.c.0.s8 %v316_v56  ;;  %v707_v4 = vand.u32 255, %v643_v60  ;;  %v715_v5 = vand.u32 255, %v651_v61  ;;  %v787_v8 = vmul.u32 299, %v435_v35 }
  0xd0   : > { %v1178_v3 = vsel %vm1150_vm5, 16843009, %v1641_v11  ;;  %v723_v6 = vand.u32 255, %v659_v62  ;;  %v731_v7 = vand.u32 255, %v667_v63  ;;  %v795_v9 = vmul.u32 299, %v443_v47 }
  0xd1   : > { %1194 = vst [vmem:[%s1855_s24 + $0x48] sm:$0xff] %v1178_v3  ;;  %v364_v10 = vunpack.c.1.s8 %v316_v56  ;;  %v835_v12 = vmul.u32 587, %v563_v55  ;;  %v843_v13 = vmul.u32 587, %v571_v57  ;;  %v372_v14 = vunpack.c.2.s8 %v316_v56 }
  0xd2   : > { %v380_v15 = vunpack.c.3.s8 %v316_v56  ;;  %v851_v16 = vmul.u32 587, %v579_v58  ;;  %v859_v17 = vmul.u32 587, %v587_v59  ;;  %v420_v18 = vand.u32 255, %v356_v2 }
  0xd3   : > { %v428_v19 = vand.u32 255, %v364_v10  ;;  %v899_v20 = vadd.s32 %v835_v12, %v771_v0  ;;  %v907_v21 = vadd.s32 %v843_v13, %v779_v1  ;;  %v963_v22 = vmul.u32 114, %v707_v4  ;;  %v461_v12 = vld [vmem:[%s1827_s11 + $0x60] sm:$0xff] }
  0xd4   : > { %v971_v23 = vmul.u32 114, %v715_v5  ;;  %v915_v25 = vadd.s32 %v851_v16, %v787_v8  ;;  %v923_v26 = vadd.s32 %v859_v17, %v795_v9  ;;  %v979_v27 = vmul.u32 114, %v723_v6  ;;  %v605_v17 = vld [vmem:[%s1836_s18 + $0x60] sm:$0xff] }
  0xd5   : > { %v987_v28 = vmul.u32 114, %v731_v7  ;;  %v1027_v29 = vadd.s32 %v963_v22, %v899_v20  ;;  %v436_v31 = vand.u32 255, %v372_v14  ;;  %v444_v32 = vand.u32 255, %v380_v15 }
  0xd6   : > { %v1035_v30 = vadd.s32 %v971_v23, %v907_v21  ;;  %v1043_v33 = vadd.s32 %v979_v27, %v915_v25  ;;  %v500_v35 = vunpack.c.0.s8 %v460_v24  ;;  %v508_v36 = vunpack.c.1.s8 %v460_v24 }
  0xd7   : > { %v1051_v34 = vadd.s32 %v987_v28, %v923_v26  ;;  %vm1091_vm6 = vcmp.gt.s32.totalorder %v1027_v29, 127000  ;;  %v516_v38 = vunpack.c.2.s8 %v460_v24  ;;  %v524_v39 = vunpack.c.3.s8 %v460_v24 }
  0xd8   : > { %vm1099_vm7 = vcmp.gt.s32.totalorder %v1035_v30, 127000  ;;  %vm1107_vm8 = vcmp.gt.s32.totalorder %v1043_v33, 127000  ;;  %v564_v40 = vand.u32 255, %v500_v35  ;;  %v572_v41 = vand.u32 255, %v508_v36 }
  0xd9   : > { %vm1115_vm9 = vcmp.gt.s32.totalorder %v1051_v34, 127000  ;;  %vm1151_vm10 = vmpackc.low %vm1099_vm7, %vm1091_vm6  ;;  %v580_v42 = vand.u32 255, %v516_v38  ;;  %v588_v43 = vand.u32 255, %v524_v39  ;;  %v644_v44 = vunpack.c.0.s8 %v604_v37 }
  0xda   : > { %vm1152_vm11 = vmpackc.low %vm1115_vm9, %vm1107_vm8  ;;  %v652_v45 = vunpack.c.1.s8 %v604_v37  ;;  %v660_v46 = vunpack.c.2.s8 %v604_v37  ;;  %v668_v47 = vunpack.c.3.s8 %v604_v37  ;;  %v772_v48 = vmul.u32 299, %v420_v18 }
  0xdb   : > { %vm1153_vm12 = vmpackc.even %vm1152_vm11, %vm1151_vm10  ;;  %v780_v49 = vmul.u32 299, %v428_v19  ;;  %v708_v52 = vand.u32 255, %v644_v44  ;;  %v788_v54 = vmul.u32 299, %v436_v31  ;;  %v357_v61 = vunpack.c.0.s8 %v317_v50  ;;  %v318_v31 = vld [vmem:[%s1819_s10 + $0x68] sm:$0xff] }
  0xdc   : > { %v1179_v51 = vsel %vm1153_vm12, 16843009, %v1641_v11  ;;  %v716_v53 = vand.u32 255, %v652_v45  ;;  %v724_v55 = vand.u32 255, %v660_v46  ;;  %v732_v56 = vand.u32 255, %v668_v47 }
  0xdd   : > { %1195 = vst [vmem:[%s1855_s24 + $0x50] sm:$0xff] %v1179_v51  ;;  %v796_v57 = vmul.u32 299, %v444_v32  ;;  %v836_v58 = vmul.u32 587, %v564_v40  ;;  %v365_v62 = vunpack.c.1.s8 %v317_v50  ;;  %v373_v2 = vunpack.c.2.s8 %v317_v50 }
  0xde   : > { %v844_v59 = vmul.u32 587, %v572_v41  ;;  %v852_v60 = vmul.u32 587, %v580_v42  ;;  %v381_v10 = vunpack.c.3.s8 %v317_v50  ;;  %v421_v15 = vand.u32 255, %v357_v61 }
  0xdf   : > { %v860_v63 = vmul.u32 587, %v588_v43  ;;  %v900_v0 = vadd.s32 %v836_v58, %v772_v48  ;;  %v964_v1 = vmul.u32 114, %v708_v52  ;;  %v429_v16 = vand.u32 255, %v365_v62 }
  0xe0   : > { %v908_v3 = vadd.s32 %v844_v59, %v780_v49  ;;  %v916_v4 = vadd.s32 %v852_v60, %v788_v54  ;;  %v972_v5 = vmul.u32 114, %v716_v53  ;;  %v980_v6 = vmul.u32 114, %v724_v55 }
  0xe1   : > { %v924_v7 = vadd.s32 %v860_v63, %v796_v57  ;;  %v988_v8 = vmul.u32 114, %v732_v56  ;;  %v1028_v9 = vadd.s32 %v964_v1, %v900_v0  ;;  %v437_v19 = vand.u32 255, %v373_v2  ;;  %v462_v56 = vld [vmem:[%s1827_s11 + $0x68] sm:$0xff] }
  0xe2   : > { %v1036_v13 = vadd.s32 %v972_v5, %v908_v3  ;;  %v1044_v14 = vadd.s32 %v980_v6, %v916_v4  ;;  %v445_v20 = vand.u32 255, %v381_v10  ;;  %v501_v21 = vunpack.c.0.s8 %v461_v12  ;;  %v606_v5 = vld [vmem:[%s1836_s18 + $0x68] sm:$0xff] }
  0xe3   : > { %v1052_v18 = vadd.s32 %v988_v8, %v924_v7  ;;  %vm1092_vm13 = vcmp.gt.s32.totalorder %v1028_v9, 127000  ;;  %v509_v22 = vunpack.c.1.s8 %v461_v12  ;;  %v517_v24 = vunpack.c.2.s8 %v461_v12 }
  0xe4   : > { %vm1100_vm14 = vcmp.gt.s32.totalorder %v1036_v13, 127000  ;;  %vm1108_vm15 = vcmp.gt.s32.totalorder %v1044_v14, 127000  ;;  %v525_v25 = vunpack.c.3.s8 %v461_v12  ;;  %v645_v26 = vunpack.c.0.s8 %v605_v17  ;;  %v319_v12 = vld [vmem:[%s1819_s10 + $0x70] sm:$0xff] }
  0xe5   : > { %vm1116_vm0 = vcmp.gt.s32.totalorder %v1052_v18, 127000  ;;  %vm1924_vm1 = vmpackc.low %vm1100_vm14, %vm1092_vm13  ;;  %v565_v27 = vand.u32 255, %v501_v21  ;;  %v573_v28 = vand.u32 255, %v509_v22  ;;  %v653_v29 = vunpack.c.1.s8 %v605_v17 }
  0xe6   : > { %vm1155_vm2 = vmpackc.low %vm1116_vm0, %vm1108_vm15  ;;  %v661_v30 = vunpack.c.2.s8 %v605_v17  ;;  %v581_v32 = vand.u32 255, %v517_v24  ;;  %v589_v33 = vand.u32 255, %v525_v25  ;;  %v669_v34 = vunpack.c.3.s8 %v605_v17 }
  0xe7   : > { %vm1156_vm3 = vmpackc.even %vm1155_vm2, %vm1924_vm1  ;;  %v709_v35 = vand.u32 255, %v645_v26  ;;  %v717_v37 = vand.u32 255, %v653_v29  ;;  %v773_v39 = vmul.u32 299, %v421_v15  ;;  %v781_v41 = vmul.u32 299, %v429_v16 }
  0xe8   : > { %v1180_v36 = vsel %vm1156_vm3, 16843009, %v1641_v11  ;;  %v725_v38 = vand.u32 255, %v661_v30  ;;  %v733_v40 = vand.u32 255, %v669_v34  ;;  %v789_v42 = vmul.u32 299, %v437_v19 }
  0xe9   : > { %1196 = vst [vmem:[%s1855_s24 + $0x58] sm:$0xff] %v1180_v36  ;;  %v358_v43 = vunpack.c.0.s8 %v318_v31  ;;  %v797_v44 = vmul.u32 299, %v445_v20  ;;  %v837_v45 = vmul.u32 587, %v565_v27  ;;  %v366_v46 = vunpack.c.1.s8 %v318_v31 }
  0xea   : > { %v374_v47 = vunpack.c.2.s8 %v318_v31  ;;  %v845_v48 = vmul.u32 587, %v573_v28  ;;  %v853_v49 = vmul.u32 587, %v581_v32  ;;  %v382_v50 = vunpack.c.3.s8 %v318_v31 }
  0xeb   : > { %v422_v51 = vand.u32 255, %v358_v43  ;;  %v861_v52 = vmul.u32 587, %v589_v33  ;;  %v901_v53 = vadd.s32 %v837_v45, %v773_v39  ;;  %v965_v54 = vmul.u32 114, %v709_v35 }
  0xec   : > { %v430_v55 = vand.u32 255, %v366_v46  ;;  %v909_v57 = vadd.s32 %v845_v48, %v781_v41  ;;  %v917_v58 = vadd.s32 %v853_v49, %v789_v42  ;;  %v973_v59 = vmul.u32 114, %v717_v37 }
  0xed   : > { %v981_v60 = vmul.u32 114, %v725_v38  ;;  %v925_v61 = vadd.s32 %v861_v52, %v797_v44  ;;  %v989_v62 = vmul.u32 114, %v733_v40  ;;  %v1029_v63 = vadd.s32 %v965_v54, %v901_v53  ;;  %v463_v40 = vld [vmem:[%s1827_s11 + $0x70] sm:$0xff] }
  0xee   : > { %v438_v0 = vand.u32 255, %v374_v47  ;;  %v1037_v1 = vadd.s32 %v973_v59, %v909_v57  ;;  %v446_v3 = vand.u32 255, %v382_v50  ;;  %v502_v4 = vunpack.c.0.s8 %v462_v56  ;;  %v607_v57 = vld [vmem:[%s1836_s18 + $0x70] sm:$0xff] }
  0xef   : > { %v1045_v2 = vadd.s32 %v981_v60, %v917_v58  ;;  %v1053_v6 = vadd.s32 %v989_v62, %v925_v61  ;;  %vm1093_vm4 = vcmp.gt.s32.totalorder %v1029_v63, 127000  ;;  %v510_v7 = vunpack.c.1.s8 %v462_v56  ;;  %v320_v60 = vld [vmem:[%s1819_s10 + $0x78] sm:$0xff] }
  0xf0   : > { %v518_v8 = vunpack.c.2.s8 %v462_v56  ;;  %vm1101_vm5 = vcmp.gt.s32.totalorder %v1037_v1, 127000  ;;  %v526_v9 = vunpack.c.3.s8 %v462_v56  ;;  %v566_v10 = vand.u32 255, %v502_v4 }
  0xf1   : > { %vm1109_vm6 = vcmp.gt.s32.totalorder %v1045_v2, 127000  ;;  %vm1117_vm7 = vcmp.gt.s32.totalorder %v1053_v6, 127000  ;;  %vm1157_vm8 = vmpackc.low %vm1101_vm5, %vm1093_vm4  ;;  %v574_v13 = vand.u32 255, %v510_v7  ;;  %v646_v15 = vunpack.c.0.s8 %v606_v5 }
  0xf2   : > { %v582_v14 = vand.u32 255, %v518_v8  ;;  %vm1158_vm9 = vmpackc.low %vm1117_vm7, %vm1109_vm6  ;;  %v590_v16 = vand.u32 255, %v526_v9  ;;  %v654_v17 = vunpack.c.1.s8 %v606_v5  ;;  %v662_v18 = vunpack.c.2.s8 %v606_v5 }
  0xf3   : > { %v670_v19 = vunpack.c.3.s8 %v606_v5  ;;  %vm1159_vm10 = vmpackc.even %vm1158_vm9, %vm1157_vm8  ;;  %v710_v20 = vand.u32 255, %v646_v15  ;;  %v774_v21 = vmul.u32 299, %v422_v51  ;;  %v782_v22 = vmul.u32 299, %v430_v55 }
  0xf4   : > { %v359_v23 = vunpack.c.0.s8 %v319_v12  ;;  %v1181_v24 = vsel %vm1159_vm10, 16843009, %v1641_v11  ;;  %v718_v25 = vand.u32 255, %v654_v17  ;;  %v726_v26 = vand.u32 255, %v662_v18 }
  0xf5   : > { %v734_v27 = vand.u32 255, %v670_v19  ;;  %1197 = vst [vmem:[%s1855_s24 + $0x60] sm:$0xff] %v1181_v24  ;;  %v790_v28 = vmul.u32 299, %v438_v0  ;;  %v798_v29 = vmul.u32 299, %v446_v3  ;;  %v367_v30 = vunpack.c.1.s8 %v319_v12 }
  0xf6   : > { %v375_v31 = vunpack.c.2.s8 %v319_v12  ;;  %v838_v32 = vmul.u32 587, %v566_v10  ;;  %v846_v33 = vmul.u32 587, %v574_v13  ;;  %v383_v34 = vunpack.c.3.s8 %v319_v12 }
  0xf7   : > { %v423_v35 = vand.u32 255, %v359_v23  ;;  %v854_v36 = vmul.u32 587, %v582_v14  ;;  %v862_v37 = vmul.u32 587, %v590_v16  ;;  %v431_v38 = vand.u32 255, %v367_v30 }
  0xf8   : > { %v439_v39 = vand.u32 255, %v375_v31  ;;  %v902_v41 = vadd.s32 %v838_v32, %v774_v21  ;;  %v910_v42 = vadd.s32 %v846_v33, %v782_v22  ;;  %v966_v43 = vmul.u32 114, %v710_v20 }
  0xf9   : > { %v974_v44 = vmul.u32 114, %v718_v25  ;;  %v918_v45 = vadd.s32 %v854_v36, %v790_v28  ;;  %v926_v46 = vadd.s32 %v862_v37, %v798_v29  ;;  %v982_v47 = vmul.u32 114, %v726_v26  ;;  %v464_v28 = vld [vmem:[%s1827_s11 + $0x78] sm:$0xff] }
  0xfa   : > { %v990_v48 = vmul.u32 114, %v734_v27  ;;  %v1030_v49 = vadd.s32 %v966_v43, %v902_v41  ;;  %v447_v51 = vand.u32 255, %v383_v34  ;;  %v503_v52 = vunpack.c.0.s8 %v463_v40  ;;  %v608_v41 = vld [vmem:[%s1836_s18 + $0x78] sm:$0xff] }
  0xfb   : > { %v1038_v50 = vadd.s32 %v974_v44, %v910_v42  ;;  %v1046_v53 = vadd.s32 %v982_v47, %v918_v45  ;;  %v511_v55 = vunpack.c.1.s8 %v463_v40  ;;  %v519_v56 = vunpack.c.2.s8 %v463_v40 }
  0xfc   : > { %v1054_v54 = vadd.s32 %v990_v48, %v926_v46  ;;  %vm1094_vm11 = vcmp.gt.s32.totalorder %v1030_v49, 127000  ;;  %v527_v58 = vunpack.c.3.s8 %v463_v40  ;;  %v567_v59 = vand.u32 255, %v503_v52 }
  0xfd   : > { %vm1102_vm12 = vcmp.gt.s32.totalorder %v1038_v50, 127000  ;;  %vm1110_vm13 = vcmp.gt.s32.totalorder %v1046_v53, 127000  ;;  %v575_v61 = vand.u32 255, %v511_v55  ;;  %v583_v62 = vand.u32 255, %v519_v56 }
  0xfe   : > { %vm1118_vm14 = vcmp.gt.s32.totalorder %v1054_v54, 127000  ;;  %vm1160_vm15 = vmpackc.low %vm1102_vm12, %vm1094_vm11  ;;  %v591_v63 = vand.u32 255, %v527_v58  ;;  %v647_v0 = vunpack.c.0.s8 %v607_v57  ;;  %v655_v1 = vunpack.c.1.s8 %v607_v57 }
  0xff   : > { %vm1161_vm0 = vmpackc.low %vm1118_vm14, %vm1110_vm13  ;;  %v663_v2 = vunpack.c.2.s8 %v607_v57  ;;  %v671_v3 = vunpack.c.3.s8 %v607_v57  ;;  %v775_v4 = vmul.u32 299, %v423_v35  ;;  %v783_v5 = vmul.u32 299, %v431_v38 }
 0x100   : > { %vm1162_vm1 = vmpackc.even %vm1161_vm0, %vm1160_vm15  ;;  %v360_v6 = vunpack.c.0.s8 %v320_v60  ;;  %v711_v8 = vand.u32 255, %v647_v0  ;;  %v719_v9 = vand.u32 255, %v655_v1  ;;  %v791_v13 = vmul.u32 299, %v439_v39 }
 0x101   : > { %v1182_v7 = vsel %vm1162_vm1, 16843009, %v1641_v11  ;;  %v727_v10 = vand.u32 255, %v663_v2  ;;  %v735_v12 = vand.u32 255, %v671_v3  ;;  %v799_v14 = vmul.u32 299, %v447_v51 }
 0x102   : > { %1198 = vst [vmem:[%s1855_s24 + $0x68] sm:$0xff] %v1182_v7  ;;  %v368_v15 = vunpack.c.1.s8 %v320_v60  ;;  %v839_v16 = vmul.u32 587, %v567_v59  ;;  %v847_v17 = vmul.u32 587, %v575_v61  ;;  %v376_v18 = vunpack.c.2.s8 %v320_v60 }
 0x103   : > { %v384_v19 = vunpack.c.3.s8 %v320_v60  ;;  %v855_v20 = vmul.u32 587, %v583_v62  ;;  %v863_v21 = vmul.u32 587, %v591_v63  ;;  %v424_v22 = vand.u32 255, %v360_v6 }
 0x104   : > { %v432_v23 = vand.u32 255, %v368_v15  ;;  %v903_v24 = vadd.s32 %v839_v16, %v775_v4  ;;  %v911_v25 = vadd.s32 %v847_v17, %v783_v5  ;;  %v967_v26 = vmul.u32 114, %v711_v8 }
 0x105   : > { %v975_v27 = vmul.u32 114, %v719_v9  ;;  %v919_v29 = vadd.s32 %v855_v20, %v791_v13  ;;  %v927_v30 = vadd.s32 %v863_v21, %v799_v14  ;;  %v983_v31 = vmul.u32 114, %v727_v10 }
 0x106   : > { %v991_v32 = vmul.u32 114, %v735_v12  ;;  %v1031_v33 = vadd.s32 %v967_v26, %v903_v24  ;;  %v440_v35 = vand.u32 255, %v376_v18  ;;  %v448_v36 = vand.u32 255, %v384_v19 }
 0x107   : > { %v1039_v34 = vadd.s32 %v975_v27, %v911_v25  ;;  %v1047_v37 = vadd.s32 %v983_v31, %v919_v29  ;;  %v504_v39 = vunpack.c.0.s8 %v464_v28  ;;  %v512_v40 = vunpack.c.1.s8 %v464_v28 }
 0x108   : > { %v1055_v38 = vadd.s32 %v991_v32, %v927_v30  ;;  %vm1095_vm2 = vcmp.gt.s32.totalorder %v1031_v33, 127000  ;;  %v520_v42 = vunpack.c.2.s8 %v464_v28  ;;  %v528_v43 = vunpack.c.3.s8 %v464_v28 }
 0x109   : > { %vm1103_vm3 = vcmp.gt.s32.totalorder %v1039_v34, 127000  ;;  %vm1111_vm4 = vcmp.gt.s32.totalorder %v1047_v37, 127000  ;;  %v568_v44 = vand.u32 255, %v504_v39  ;;  %v576_v45 = vand.u32 255, %v512_v40 }
 0x10a   : > { %vm1119_vm5 = vcmp.gt.s32.totalorder %v1055_v38, 127000  ;;  %vm1163_vm6 = vmpackc.low %vm1103_vm3, %vm1095_vm2  ;;  %v584_v46 = vand.u32 255, %v520_v42  ;;  %v592_v47 = vand.u32 255, %v528_v43  ;;  %v648_v48 = vunpack.c.0.s8 %v608_v41 }
 0x10b   : > { %vm1164_vm7 = vmpackc.low %vm1119_vm5, %vm1111_vm4  ;;  %v656_v49 = vunpack.c.1.s8 %v608_v41  ;;  %v664_v50 = vunpack.c.2.s8 %v608_v41  ;;  %v672_v51 = vunpack.c.3.s8 %v608_v41  ;;  %v776_v52 = vmul.u32 299, %v424_v22 }
 0x10c   : > { %vm1165_vm8 = vmpackc.even %vm1164_vm7, %vm1163_vm6  ;;  %v784_v53 = vmul.u32 299, %v432_v23  ;;  %v712_v55 = vand.u32 255, %v648_v48  ;;  %v792_v57 = vmul.u32 299, %v440_v35 }
 0x10d   : > { %v1183_v54 = vsel %vm1165_vm8, 16843009, %v1641_v11  ;;  %v720_v56 = vand.u32 255, %v656_v49  ;;  %v728_v58 = vand.u32 255, %v664_v50  ;;  %v736_v59 = vand.u32 255, %v672_v51 }
 0x10e   : > { %1199 = vst [vmem:[%s1855_s24 + $0x70] sm:$0xff] %v1183_v54  ;;  %v800_v60 = vmul.u32 299, %v448_v36  ;;  %v840_v61 = vmul.u32 587, %v568_v44 }
 0x10f   : > { %v848_v62 = vmul.u32 587, %v576_v45  ;;  %v856_v63 = vmul.u32 587, %v584_v46 }
 0x110   : > { %v864_v0 = vmul.u32 587, %v592_v47  ;;  %v904_v1 = vadd.s32 %v840_v61, %v776_v52  ;;  %v968_v2 = vmul.u32 114, %v712_v55 }
 0x111   : > { %v912_v3 = vadd.s32 %v848_v62, %v784_v53  ;;  %v920_v4 = vadd.s32 %v856_v63, %v792_v57  ;;  %v976_v5 = vmul.u32 114, %v720_v56  ;;  %v984_v6 = vmul.u32 114, %v728_v58 }
 0x112   : > { %v928_v7 = vadd.s32 %v864_v0, %v800_v60  ;;  %v992_v8 = vmul.u32 114, %v736_v59  ;;  %v1032_v9 = vadd.s32 %v968_v2, %v904_v1 }
 0x113   : > { %v1040_v10 = vadd.s32 %v976_v5, %v912_v3  ;;  %v1048_v12 = vadd.s32 %v984_v6, %v920_v4 }
 0x114   : > { %v1056_v13 = vadd.s32 %v992_v8, %v928_v7  ;;  %vm1096_vm9 = vcmp.gt.s32.totalorder %v1032_v9, 127000 }
 0x115   : > { %vm1104_vm10 = vcmp.gt.s32.totalorder %v1040_v10, 127000  ;;  %vm1112_vm11 = vcmp.gt.s32.totalorder %v1048_v12, 127000 }
 0x116   : > { %vm1120_vm12 = vcmp.gt.s32.totalorder %v1056_v13, 127000  ;;  %vm1166_vm13 = vmpackc.low %vm1104_vm10, %vm1096_vm9 }
 0x117   : > { %vm1167_vm14 = vmpackc.low %vm1120_vm12, %vm1112_vm11 }
 0x118   : > { %vm1168_vm15 = vmpackc.even %vm1167_vm14, %vm1166_vm13 }
 0x119   : > { %v1184_v14 = vsel %vm1168_vm15, 16843009, %v1641_v11 }
 0x11a   : > { %1200 = vst [vmem:[%s1855_s24 + $0x78] sm:$0xff] %v1184_v14 }
 0x11b   : > { %1563 = shalt.err (!%p1560_p4)
}
 0x11c   : > { %s1564_s8 = scalar_lea.hbm %s1952_s16, 2048  ;;  %s1568_s4 = scalar_lea.hbm %s2006_s3, 16384 }
 0x11d   : > { %p1565_p0 = scmp.ne.s32.totalorder %s1952_s16, %s1564_s8  ;;  %p1569_p6 = scmp.lt.s32.totalorder %s1952_s16, %s2006_s3 }
 0x11e   : > { %p1570_p7 = scmp.lt.s32.totalorder %s1568_s4, %s1564_s8 }
 0x11f   : > { %p1566_p1 = pnand %p1565_p0, %p1720_p9 }
 0x120   : > { %p1571_p8 = por %p1570_p7, %p1569_p6 }
 0x121   : > { %p1567_p5 = pneg %p1566_p1 }
 0x123   : > { %p1572_p13 = pnand %p1571_p8, %p1567_p5 }
 0x125   : > { %1575 = shalt.err (!%p1572_p13)
}
 0x126   : > { %s1643_s20 = smov 1024   ;;  %s1644_s30 = smov 64  }
 0x127   : > { %1395 = dma.vmem_to_hbm [thread:$0]  (%p1720_p9), %s1954_s7, 2048, %s1952_s16, %s1202_s15, %s1643_s20, %s1643_s20, %s1644_s30  }
 0x128 PF: > { %p1412_p2 = scmp.ge.s32.totalorder %s1634_s17, 2  ;;  %s1233_s11 = sand.u32 1, %s1614_s12  }
 0x129   : > { %s1234_s18 = scalar_lea.sflag [#allocation4], %s1233_s11 }
 0x12a   : > { %p1408_p3 = pnand %p1412_p2, %p1727_p11 }
 0x12c   : > { %p1409_p10 = pneg %p1408_p3 }
 0x12e   : > { %1609 = dma.done.wait (%p1409_p10), %s1234_s18, 2048  }
 0x12f   : > { %1611 = vsyncadd (%p1409_p10), %s1234_s18, 4294965248  ;;  %s22_s17 = sadd.s32 1, %s1634_s17   ;;  %s2031_s25 = sld [smem:[#allocation14_spill]] }
 0x130   : > { %p19_p12 = scmp.ge.s32.totalorder %s22_s17, 10   ;;  %s2032_s15 = sld [smem:[#allocation12_spill]] }
 0x131   : > { %s2033_s16 = sld [smem:[#allocation13_spill]]  ;;  %s2034_s12 = smov %s1618_s13 }
 0x132   : > { %s2035_s13 = smov %s1622_s14  ;;  %21 = sbr.rel (!%p19_p12) target bundleno = 10 (0xa), region = 101 }
 0x135   : > { %s2036_s14 = smov %s2031_s25 }
 0x137   :  { %1239 = vsyncpa [#allocation3], 1 }
 0x138   :  { %1241 = vsyncpa [#allocation3 + $0x1], 1 }
 0x139   :  { %1242 = vsyncpa [#allocation6], 1 }
 0x13a   :  { %1244 = vsyncpa [#allocation6 + $0x1], 1 }
 0x13b   :  { %1245 = vsyncpa [#allocation4], 1 }
 0x13c   :  { %1247 = vsyncpa [#allocation4 + $0x1], 1 }

</bundles_post_ra>
